<compile_context>
chip_gen: v7x
topology: tpu7x:2x2x1
jax: 0.10.0
libtpu: 0.0.40
codegen_flags: <defaults>
</compile_context>

<pallas_src>
import functools
import math

import jax
import jax.numpy as jnp
from jax.experimental import pallas as pl
from jax.experimental.pallas import tpu as pltpu


def _sinkhorn_kernel(x_ref, y_ref, cost_ref, pi_ref, c_ref, k_ref, done_ref, *,
                     eps, max_iter, thresh):
    x = x_ref[...]                       # (B, N, D) f32
    y = y_ref[...]                       # (B, N, D) f32
    B, N, _ = x.shape

    # ---- cost matrix C[b,i,j] = ||x_bi - y_bj||^2 (Gram term on the MXU) ----
    xy = jnp.einsum("bnd,bmd->bnm", x, y,
                    preferred_element_type=jnp.float32)        # (B, N, N)
    x_sq = jnp.sum(x * x, axis=-1, keepdims=True)              # (B, N, 1)
    y_sq = jnp.sum(y * y, axis=-1)[:, None, :]                 # (B, 1, N)
    C = x_sq + y_sq - 2.0 * xy                                 # (B, N, N)
    c_ref[...] = C

    inv_eps = 1.0 / eps
    log_marg = math.log(1.0 / N + 1e-8)     # log(mu + 1e-8) == log(nu + 1e-8)

    # K == exp(M(C, u, v)); with u = v = 0 this is exp(-C/eps).
    k_ref[...] = jnp.exp(C * (-inv_eps))
    done_ref[0] = jnp.int32(0)

    def body(_, carry):
        @pl.when(done_ref[0] == 0)
        def _step():
            K = k_ref[...]                                              # exp(M(u, v))
            # u-update: u_new = eps*(log_marg - lse_row(M(u,v))) + u  => delta_u = eps*t_u
            row_sum = jnp.sum(K, axis=-1, keepdims=True)                # (B, N, 1)
            t_u = log_marg - jnp.log(row_sum + 1e-6)                    # (B, N, 1)
            K1 = K * jnp.exp(t_u)                                       # exp(M(u_new, v))
            # v-update uses the new u (column lse over the sublane axis).
            col_sum = jnp.sum(K1, axis=-2, keepdims=True)               # (B, 1, N)
            t_v = log_marg - jnp.log(col_sum + 1e-6)                    # (B, 1, N)
            k_ref[...] = K1 * jnp.exp(t_v)                              # exp(M(u_new, v_new))
            # err = mean over batch of sum_i |u_new - u|  ==  eps/B * sum |t_u|
            err = (eps / B) * jnp.sum(jnp.abs(t_u))
            done_ref[0] = jnp.where(err < thresh, jnp.int32(1), jnp.int32(0))
        return carry

    jax.lax.fori_loop(0, max_iter, body, jnp.int32(0))

    # ---- transport plan (pi == K) and per-batch transport cost ----
    pi = k_ref[...]
    Cf = c_ref[...]
    pi_ref[...] = pi
    cost_ref[...] = jnp.sum(jnp.sum(pi * Cf, axis=-1, keepdims=True),
                            axis=-2, keepdims=True)                      # (B, 1, 1)


def sinkhorn_distance(x, y, *, eps, max_iter, reduction="mean"):
    """Forward pass of the PyTorch SinkhornDistance module.

    x, y: (B, n_points, dim) or (n_points, dim), float32.
    Returns (cost, pi, C) like the PyTorch module.
    """
    squeeze = (x.ndim == 2)
    if squeeze:
        x, y = x[None], y[None]
    assert x.shape == y.shape, "x and y must share (batch, n_points, dim)"
    B, N, D = x.shape

    x = x.astype(jnp.float32)
    y = y.astype(jnp.float32)

    kernel = functools.partial(_sinkhorn_kernel, eps=float(eps),
                               max_iter=int(max_iter), thresh=0.1)

    cost_pb, pi, C = pl.pallas_call(
        kernel,
        out_shape=(
            jax.ShapeDtypeStruct((B, 1, 1), jnp.float32),   # per-batch cost
            jax.ShapeDtypeStruct((B, N, N), jnp.float32),   # transport plan pi
            jax.ShapeDtypeStruct((B, N, N), jnp.float32),   # cost matrix C
        ),
        in_specs=[
            pl.BlockSpec(memory_space=pltpu.MemorySpace.VMEM),
            pl.BlockSpec(memory_space=pltpu.MemorySpace.VMEM),
        ],
        out_specs=(
            pl.BlockSpec(memory_space=pltpu.MemorySpace.VMEM),
            pl.BlockSpec(memory_space=pltpu.MemorySpace.VMEM),
            pl.BlockSpec(memory_space=pltpu.MemorySpace.VMEM),
        ),
        scratch_shapes=[
            pltpu.VMEM((B, N, N), jnp.float32),   # K = exp(M(C,u,v)), stays resident
            pltpu.SMEM((1,), jnp.int32),          # convergence ("done") flag
        ],
    )(x, y)

    cost_pb = cost_pb.reshape(B)
    if reduction == "mean":
        cost = cost_pb.mean()
    elif reduction == "sum":
        cost = cost_pb.sum()
    else:
        cost = cost_pb[0] if squeeze else cost_pb
    if squeeze:
        pi, C = pi[0], C[0]
    return cost, pi, C


def sinkhorn_reference(x, y, eps, max_iter, reduction="mean"):
    """Eager, line-by-line JAX port of the PyTorch SinkhornDistance.forward."""
    x_col = x[..., :, None, :]
    y_lin = y[..., None, :, :]
    C = jnp.sum(jnp.abs(x_col - y_lin) ** 2, -1)
    n_points = x.shape[-2]
    batch_size = 1 if x.ndim == 2 else x.shape[0]
    mu = jnp.squeeze(jnp.full((batch_size, n_points), 1.0 / n_points, jnp.float32))
    nu = jnp.squeeze(jnp.full((batch_size, n_points), 1.0 / n_points, jnp.float32))
    u = jnp.zeros_like(mu)
    v = jnp.zeros_like(nu)
    thresh = 0.1

    def M(C, u, v):
        return (-C + u[..., :, None] + v[..., None, :]) / eps

    def lse(A):
        return jnp.log(jnp.exp(A).sum(-1) + 1e-6)

    for _ in range(max_iter):
        u1 = u
        u = eps * (jnp.log(mu + 1e-8) - lse(M(C, u, v))) + u
        v = eps * (jnp.log(nu + 1e-8) - lse(jnp.swapaxes(M(C, u, v), -2, -1))) + v
        err = jnp.mean(jnp.sum(jnp.abs(u - u1), axis=-1))
        if float(err) < thresh:
            break

    pi = jnp.exp(M(C, u, v))
    cost = jnp.sum(pi * C, axis=(-2, -1))
    if reduction == "mean":
        cost = cost.mean()
    elif reduction == "sum":
        cost = cost.sum()
    return cost, pi, C


if __name__ == "__main__":
    batch, n_points, dim = 2, 128, 4   # n_points=128 keeps the (N,N) tensors lane-dense
    eps, max_iter = 1.0, 50

    key = jax.random.PRNGKey(0)
    kx, ky = jax.random.split(key)
    x = jax.random.normal(kx, (batch, n_points, dim), jnp.float32)
    y = 0.5 * jax.random.normal(ky, (batch, n_points, dim), jnp.float32) + 0.25

    cost, pi, C = sinkhorn_distance(x, y, eps=eps, max_iter=max_iter, reduction="mean")
    cost, pi, C = jax.block_until_ready((cost, pi, C))

    cost_ref, pi_ref, C_ref = sinkhorn_reference(x, y, eps, max_iter, reduction="mean")

    assert C.shape == (batch, n_points, n_points)
    assert pi.shape == (batch, n_points, n_points)
    assert jnp.allclose(C, C_ref, atol=2e-3, rtol=1e-3), "cost matrix mismatch"
    assert jnp.allclose(pi, pi_ref, atol=5e-3), "transport plan mismatch"
    assert jnp.allclose(cost, cost_ref, rtol=1e-2, atol=1e-2), "sinkhorn cost mismatch"

    print("KERNEL_OK")
</pallas_src>

<mosaic_0001>
module attributes {stable_mosaic.version = 11 : i64} {
  func.func @_sinkhorn_kernel(%arg0: memref<2x128x4xf32, #tpu.memory_space<vmem>>, %arg1: memref<2x128x4xf32, #tpu.memory_space<vmem>>, %arg2: memref<2x1x1xf32, #tpu.memory_space<vmem>>, %arg3: memref<2x128x128xf32, #tpu.memory_space<vmem>>, %arg4: memref<2x128x128xf32, #tpu.memory_space<vmem>>, %arg5: memref<2x128x128xf32, #tpu.memory_space<vmem>>, %arg6: memref<1xi32, #tpu.memory_space<smem>>) attributes {dimension_semantics = [], scalar_prefetch = 0 : i64, scratch_operands = 2 : i64, tpu.core_type = #tpu.core_type<tc>} {
    %c0 = arith.constant 0 : index
    %c0_0 = arith.constant 0 : index
    %c0_1 = arith.constant 0 : index
    %0 = vector.load %arg0[%c0, %c0_0, %c0_1] : memref<2x128x4xf32, #tpu.memory_space<vmem>>, vector<2x128x4xf32>
    %c0_2 = arith.constant 0 : index
    %c0_3 = arith.constant 0 : index
    %c0_4 = arith.constant 0 : index
    %1 = vector.load %arg1[%c0_2, %c0_3, %c0_4] : memref<2x128x4xf32, #tpu.memory_space<vmem>>, vector<2x128x4xf32>
    "tpu.trace_start"() <{level = 10 : i32, message = "bnd,bmd->bnm"}> : () -> ()
    %cst = arith.constant dense<0.000000e+00> : vector<2x128x128xf32>
    %2 = tpu.matmul %0, %1, %cst {dimension_numbers = #tpu.dot_dimension_numbers<[2], [2], [1], [1], [0, 0, 0, 1, 1, 1], [0], [0]>} : vector<2x128x4xf32>, vector<2x128x4xf32>, vector<2x128x128xf32> -> vector<2x128x128xf32>
    "tpu.trace_stop"() : () -> ()
    %3 = arith.mulf %0, %0 : vector<2x128x4xf32>
    %cst_5 = arith.constant dense<0.000000e+00> : vector<2x128xf32>
    %4 = vector.multi_reduction <add>, %3, %cst_5 [2] : vector<2x128x4xf32> to vector<2x128xf32>
    %5 = vector.shape_cast %4 : vector<2x128xf32> to vector<2x128x1xf32>
    %6 = arith.mulf %1, %1 : vector<2x128x4xf32>
    %cst_6 = arith.constant dense<0.000000e+00> : vector<2x128xf32>
    %7 = vector.multi_reduction <add>, %6, %cst_6 [2] : vector<2x128x4xf32> to vector<2x128xf32>
    %8 = vector.shape_cast %7 : vector<2x128xf32> to vector<2x1x128xf32>
    %9 = vector.broadcast %5 : vector<2x128x1xf32> to vector<2x128x128xf32>
    %10 = vector.broadcast %8 : vector<2x1x128xf32> to vector<2x128x128xf32>
    %11 = arith.addf %9, %10 : vector<2x128x128xf32>
    %cst_7 = arith.constant 2.000000e+00 : f32
    %12 = vector.broadcast %cst_7 : f32 to vector<2x128x128xf32>
    %13 = arith.mulf %12, %2 : vector<2x128x128xf32>
    %14 = arith.subf %11, %13 : vector<2x128x128xf32>
    %c0_8 = arith.constant 0 : index
    %c0_9 = arith.constant 0 : index
    %c0_10 = arith.constant 0 : index
    %15 = vector.load %arg4[%c0_8, %c0_9, %c0_10] : memref<2x128x128xf32, #tpu.memory_space<vmem>>, vector<2x128x128xf32>
    tpu.vector_store %arg4[%c0_8, %c0_9, %c0_10], %14 {strides = array<i32>} : memref<2x128x128xf32, #tpu.memory_space<vmem>>, vector<2x128x128xf32>,
    %cst_11 = arith.constant -1.000000e+00 : f32
    %16 = vector.broadcast %cst_11 : f32 to vector<2x128x128xf32>
    %17 = arith.mulf %14, %16 : vector<2x128x128xf32>
    %18 = math.exp %17 : vector<2x128x128xf32>
    %c0_12 = arith.constant 0 : index
    %c0_13 = arith.constant 0 : index
    %c0_14 = arith.constant 0 : index
    %19 = vector.load %arg5[%c0_12, %c0_13, %c0_14] : memref<2x128x128xf32, #tpu.memory_space<vmem>>, vector<2x128x128xf32>
    tpu.vector_store %arg5[%c0_12, %c0_13, %c0_14], %18 {strides = array<i32>} : memref<2x128x128xf32, #tpu.memory_space<vmem>>, vector<2x128x128xf32>,
    %c0_i32 = arith.constant 0 : i32
    %c0_15 = arith.constant 0 : index
    %20 = memref.load %arg6[%c0_15] : memref<1xi32, #tpu.memory_space<smem>>
    memref.store %c0_i32, %arg6[%c0_15] : memref<1xi32, #tpu.memory_space<smem>>
    %c0_i32_16 = arith.constant 0 : i32
    %c50_i32 = arith.constant 50 : i32
    %21 = arith.addi %c0_i32_16, %c50_i32 : i32
    %c1_i32 = arith.constant 1 : i32
    scf.for %arg7 = %c0_i32_16 to %21 step %c1_i32  : i32 {
      %c0_31 = arith.constant 0 : index
      %31 = memref.load %arg6[%c0_31] : memref<1xi32, #tpu.memory_space<smem>>
      %c0_i32_32 = arith.constant 0 : i32
      %32 = arith.cmpi eq, %31, %c0_i32_32 : i32
      %33 = arith.extui %32 : i1 to i32
      %c0_i32_33 = arith.constant 0 : i32
      %34 = arith.cmpi ne, %33, %c0_i32_33 : i32
      scf.if %34 {
        %c0_34 = arith.constant 0 : index
        %c0_35 = arith.constant 0 : index
        %c0_36 = arith.constant 0 : index
        %35 = vector.load %arg5[%c0_34, %c0_35, %c0_36] : memref<2x128x128xf32, #tpu.memory_space<vmem>>, vector<2x128x128xf32>
        %cst_37 = arith.constant dense<0.000000e+00> : vector<2x128xf32>
        %36 = vector.multi_reduction <add>, %35, %cst_37 [2] : vector<2x128x128xf32> to vector<2x128xf32>
        %37 = vector.shape_cast %36 : vector<2x128xf32> to vector<2x128x1xf32>
        %cst_38 = arith.constant 9.99999997E-7 : f32
        %38 = vector.broadcast %cst_38 : f32 to vector<2x128x1xf32>
        %39 = arith.addf %37, %38 : vector<2x128x1xf32>
        %40 = math.log %39 : vector<2x128x1xf32>
        %cst_39 = arith.constant -4.85202885 : f32
        %41 = vector.broadcast %cst_39 : f32 to vector<2x128x1xf32>
        %42 = arith.subf %41, %40 : vector<2x128x1xf32>
        %43 = math.exp %42 : vector<2x128x1xf32>
        %44 = vector.broadcast %43 : vector<2x128x1xf32> to vector<2x128x128xf32>
        %45 = arith.mulf %35, %44 : vector<2x128x128xf32>
        %cst_40 = arith.constant dense<0.000000e+00> : vector<2x128xf32>
        %46 = vector.multi_reduction <add>, %45, %cst_40 [1] : vector<2x128x128xf32> to vector<2x128xf32>
        %47 = vector.shape_cast %46 : vector<2x128xf32> to vector<2x1x128xf32>
        %cst_41 = arith.constant 9.99999997E-7 : f32
        %48 = vector.broadcast %cst_41 : f32 to vector<2x1x128xf32>
        %49 = arith.addf %47, %48 : vector<2x1x128xf32>
        %50 = math.log %49 : vector<2x1x128xf32>
        %cst_42 = arith.constant -4.85202885 : f32
        %51 = vector.broadcast %cst_42 : f32 to vector<2x1x128xf32>
        %52 = arith.subf %51, %50 : vector<2x1x128xf32>
        %53 = math.exp %52 : vector<2x1x128xf32>
        %54 = vector.broadcast %53 : vector<2x1x128xf32> to vector<2x128x128xf32>
        %55 = arith.mulf %45, %54 : vector<2x128x128xf32>
        %c0_43 = arith.constant 0 : index
        %c0_44 = arith.constant 0 : index
        %c0_45 = arith.constant 0 : index
        %56 = vector.load %arg5[%c0_43, %c0_44, %c0_45] : memref<2x128x128xf32, #tpu.memory_space<vmem>>, vector<2x128x128xf32>
        tpu.vector_store %arg5[%c0_43, %c0_44, %c0_45], %55 {strides = array<i32>} : memref<2x128x128xf32, #tpu.memory_space<vmem>>, vector<2x128x128xf32>,
        %57 = math.absf %42 : vector<2x128x1xf32>
        %58 = vector.shape_cast %57 : vector<2x128x1xf32> to vector<1x2x128x1xf32>
        %cst_46 = arith.constant dense<0.000000e+00> : vector<1xf32>
        %59 = vector.multi_reduction <add>, %58, %cst_46 [1, 2, 3] : vector<1x2x128x1xf32> to vector<1xf32>
        %60 = vector.shape_cast %59 : vector<1xf32> to vector<1x1x1x1xf32>
        %61 = vector.extract %60[0, 0, 0, 0] : f32 from vector<1x1x1x1xf32>
        %cst_47 = arith.constant 5.000000e-01 : f32
        %62 = arith.mulf %cst_47, %61 : f32
        %cst_48 = arith.constant 1.000000e-01 : f32
        %63 = arith.cmpf olt, %62, %cst_48 : f32
        %c1_i32_49 = arith.constant 1 : i32
        %c0_i32_50 = arith.constant 0 : i32
        %64 = arith.select %63, %c1_i32_49, %c0_i32_50 : i32
        %c0_51 = arith.constant 0 : index
        %65 = memref.load %arg6[%c0_51] : memref<1xi32, #tpu.memory_space<smem>>
        memref.store %64, %arg6[%c0_51] : memref<1xi32, #tpu.memory_space<smem>>
      } else {
      }
    }
    %c0_17 = arith.constant 0 : index
    %c0_18 = arith.constant 0 : index
    %c0_19 = arith.constant 0 : index
    %22 = vector.load %arg5[%c0_17, %c0_18, %c0_19] : memref<2x128x128xf32, #tpu.memory_space<vmem>>, vector<2x128x128xf32>
    %c0_20 = arith.constant 0 : index
    %c0_21 = arith.constant 0 : index
    %c0_22 = arith.constant 0 : index
    %23 = vector.load %arg4[%c0_20, %c0_21, %c0_22] : memref<2x128x128xf32, #tpu.memory_space<vmem>>, vector<2x128x128xf32>
    %c0_23 = arith.constant 0 : index
    %c0_24 = arith.constant 0 : index
    %c0_25 = arith.constant 0 : index
    %24 = vector.load %arg3[%c0_23, %c0_24, %c0_25] : memref<2x128x128xf32, #tpu.memory_space<vmem>>, vector<2x128x128xf32>
    tpu.vector_store %arg3[%c0_23, %c0_24, %c0_25], %22 {strides = array<i32>} : memref<2x128x128xf32, #tpu.memory_space<vmem>>, vector<2x128x128xf32>,
    %25 = arith.mulf %22, %23 : vector<2x128x128xf32>
    %cst_26 = arith.constant dense<0.000000e+00> : vector<2x128xf32>
    %26 = vector.multi_reduction <add>, %25, %cst_26 [2] : vector<2x128x128xf32> to vector<2x128xf32>
    %27 = vector.shape_cast %26 : vector<2x128xf32> to vector<2x128x1xf32>
    %cst_27 = arith.constant dense<0.000000e+00> : vector<2x1xf32>
    %28 = vector.multi_reduction <add>, %27, %cst_27 [1] : vector<2x128x1xf32> to vector<2x1xf32>
    %29 = vector.shape_cast %28 : vector<2x1xf32> to vector<2x1x1xf32>
    %c0_28 = arith.constant 0 : index
    %c0_29 = arith.constant 0 : index
    %c0_30 = arith.constant 0 : index
    %30 = vector.load %arg2[%c0_28, %c0_29, %c0_30] : memref<2x1x1xf32, #tpu.memory_space<vmem>>, vector<2x1x1xf32>
    tpu.vector_store %arg2[%c0_28, %c0_29, %c0_30], %29 {strides = array<i32>} : memref<2x1x1xf32, #tpu.memory_space<vmem>>, vector<2x1x1xf32>,
    return
  }
}

</mosaic_0001>

<bundles_post_ra>
// kernel: tpu_custom_call.1
= control target key start
LH: loop header
LB: loop body
LE: loop exit
PB: predicated region body
PF: predicated region fallthrough
CT: control target
= control target key end

     0   :  { %10 = vsyncpa [#allocation5], 0  ;;  %s4029_s0 = inlined_call_operand.vmem [shape: f32[2,128,4], index: 0, kind: input, shape index: {}]   ;;  %s4030_s1 = inlined_call_operand.vmem [shape: f32[2,128,4], index: 1, kind: input, shape index: {}]   ;;  %s4031_s2 = inlined_call_operand.vmem [shape: f32[2,1,1], index: 2, kind: output, shape index: {0}]   ;;  %s4032_s3 = inlined_call_operand.hbm [shape: f32[2,128,128], index: 3, kind: output, shape index: {1}]   ;;  %s4033_s4 = inlined_call_operand.hbm [shape: f32[2,128,128], index: 4, kind: output, shape index: {2}]  }
   0x1   :  { %11 = vsyncpa [#allocation7], 0  ;;  %v2796_v0 = vld [vmem:[%s4030_s1] sm:$0xff]  ;;  %v2801_v1 = vld [vmem:[%s4030_s1 + $0x8] sm:$0xff]  ;;  %vm80_vm0 = vcmask 31744   ;;  %vm862_vm2 = vcmask 130112  }
   0x2   :  { %v2396_v2 = vpack.c.bf16 %v2801_v1, %v2796_v0  ;;  %vm2807_vm1 = vmpackc.low %vm80_vm0, %vm80_vm0  ;;  %v2814_v4 = vld [vmem:[%s4030_s1 + $0x80] sm:$0xff]  ;;  %v2819_v5 = vld [vmem:[%s4030_s1 + $0x88] sm:$0xff]  ;;  %v692_v53 = vmul.f32 %v2801_v1, %v2801_v1  ;;  %v691_v56 = vmul.f32 %v2796_v0, %v2796_v0  ;;  %vm869_vm3 = vcmask 195712   ;;  %s3679_s11 = smov 0  }
   0x3   :  { %v2444_v6 = vpack.c.bf16 %v2819_v5, %v2814_v4  ;;  %v2826_v7 = vld [vmem:[%s4029_s0 + $0x10] sm:$0xff]  ;;  %v16_v8 = vld [vmem:[%s4029_s0] sm:$0xff]  ;;  %v2834_v9 = vld [vmem:[%s4029_s0 + $0x18] sm:$0xff]  ;;  %v708_v58 = vmul.f32 %v2819_v5, %v2819_v5  ;;  %v707_v63 = vmul.f32 %v2814_v4, %v2814_v4  ;;  %vm876_vm4 = vcmask 261312  }
   0x4   :  { %2398 = vmatprep.subr.msk.bf16.mxu0 %vm2807_vm1, %v2396_v2  ;;  %v565_v10 = vmul.f32 %v2826_v7, %v2826_v7  ;;  %v563_v11 = vmul.f32 %v16_v8, %v16_v8  ;;  %v566_v12 = vmul.f32 %v2834_v9, %v2834_v9  ;;  %v2845_v13 = vld [vmem:[%s4029_s0 + $0x8] sm:$0xff]  ;;  %v2850_v14 = vld [vmem:[%s4030_s1 + $0x10] sm:$0xff]  ;;  %v2855_v15 = vld [vmem:[%s4030_s1 + $0x18] sm:$0xff]  ;;  %2316 = vmatprep.mubr.msk.f32.mxu0 %vm80_vm0, %v16_v8  ;;  %v726_v61 = vsel %vm80_vm0, %v692_v53, 0.0 }
   0x5   :  { %2446 = vmatprep.subr.msk.bf16.mxu1 %vm2807_vm1, %v2444_v6  ;;  %2401 = vmatpush3.bf16.xpose.msk.msra.mxu0 %vm2807_vm1, %v2396_v2  ;;  %v564_v16 = vmul.f32 %v2845_v13, %v2845_v13  ;;  %v2402_v17 = vpack.c.bf16 %v2855_v15, %v2850_v14  ;;  %v2869_v18 = vld [vmem:[%s4030_s1 + $0x90] sm:$0xff]  ;;  %v2874_v19 = vld [vmem:[%s4030_s1 + $0x98] sm:$0xff]  ;;  %v2879_v20 = vld [vmem:[%s4029_s0 + $0x28] sm:$0xff]  ;;  %v723_v62 = vsel %vm80_vm0, %v691_v56, 0.0  ;;  %v774_v5 = vsel %vm80_vm0, %v708_v58, 0.0 }
   0x6   :  { %2449 = vmatpush3.bf16.xpose.msk.msra.mxu1 %vm2807_vm1, %v2444_v6  ;;  %v601_v21 = vsel %vm80_vm0, %v565_v10, 0.0  ;;  %v595_v22 = vsel %vm80_vm0, %v563_v11, 0.0  ;;  %v2450_v23 = vpack.c.bf16 %v2874_v19, %v2869_v18  ;;  %v2890_v24 = vld [vmem:[%s4029_s0 + $0x20] sm:$0xff]  ;;  %v2900_v26 = vld [vmem:[%s4030_s1 + $0x28] sm:$0xff]  ;;  %v604_v27 = vsel %vm80_vm0, %v566_v12, 0.0  ;;  %v2915_v31 = vld [vmem:[%s4029_s0 + $0x38] sm:$0xff] }
   0x7   :  { %602 = vadd.xlane.f32.xlu1 %v601_v21  ;;  %596 = vadd.xlane.f32.xlu0 %v595_v22  ;;  %v2895_v25 = vld [vmem:[%s4030_s1 + $0x20] sm:$0xff]  ;;  %v598_v28 = vsel %vm80_vm0, %v564_v16, 0.0  ;;  %v568_v29 = vmul.f32 %v2879_v20, %v2879_v20  ;;  %v567_v30 = vmul.f32 %v2890_v24, %v2890_v24  ;;  %v2920_v32 = vld [vmem:[%s4029_s0 + $0x30] sm:$0xff]  ;;  %v2930_v34 = vld [vmem:[%s4030_s1 + $0xa8] sm:$0xff]  ;;  %v570_v36 = vmul.f32 %v2915_v31, %v2915_v31 }
   0x8   :  { %2404 = vmatprep.subr.msk.bf16.mxu0 %vm2807_vm1, %v2402_v17  ;;  %2452 = vmatprep.subr.msk.bf16.mxu1 %vm2807_vm1, %v2450_v23  ;;  %v2925_v33 = vld [vmem:[%s4030_s1 + $0xa0] sm:$0xff]  ;;  %v2408_v35 = vpack.c.bf16 %v2900_v26, %v2895_v25  ;;  %v569_v39 = vmul.f32 %v2920_v32, %v2920_v32  ;;  %v2947_v41 = vld [vmem:[%s4029_s0 + $0x48] sm:$0xff]  ;;  %v2961_v43 = vld [vmem:[%s4030_s1 + $0x30] sm:$0xff]  ;;  %v771_v6 = vsel %vm80_vm0, %v707_v63, 0.0  ;;  %v709_v4 = vmul.f32 %v2869_v18, %v2869_v18 }
   0x9   :  { %v610_v37 = vsel %vm80_vm0, %v568_v29, 0.0  ;;  %v607_v38 = vsel %vm80_vm0, %v567_v30, 0.0  ;;  %v2456_v40 = vpack.c.bf16 %v2930_v34, %v2925_v33  ;;  %v2952_v42 = vld [vmem:[%s4029_s0 + $0x40] sm:$0xff]  ;;  %v2966_v44 = vld [vmem:[%s4030_s1 + $0x38] sm:$0xff]  ;;  %v616_v46 = vsel %vm80_vm0, %v570_v36, 0.0  ;;  %v2986_v50 = vld [vmem:[%s4030_s1 + $0xb0] sm:$0xff] }
   0xa   :  { %v2971_v45 = vld [vmem:[%s4029_s0 + $0x80] sm:$0xff]  ;;  %v613_v47 = vsel %vm80_vm0, %v569_v39, 0.0  ;;  %v572_v48 = vmul.f32 %v2947_v41, %v2947_v41  ;;  %v571_v49 = vmul.f32 %v2952_v42, %v2952_v42  ;;  %v2991_v51 = vld [vmem:[%s4030_s1 + $0xb8] sm:$0xff]  ;;  %v2414_v52 = vpack.c.bf16 %v2966_v44, %v2961_v43  ;;  %v3019_v60 = vld [vmem:[%s4030_s1 + $0x48] sm:$0xff] }
   0xb   :  { %605 = vadd.xlane.f32.xlu1 %v604_v27  ;;  %599 = vadd.xlane.f32.xlu0 %v598_v28  ;;  %v2462_v57 = vpack.c.bf16 %v2991_v51, %v2986_v50  ;;  %v3014_v59 = vld [vmem:[%s4030_s1 + $0x40] sm:$0xff]  ;;  %v3035_v1 = vld [vmem:[%s4030_s1 + $0xc8] sm:$0xff]  ;;  %v693_v8 = vmul.f32 %v2850_v14, %v2850_v14  ;;  %v3056_v11 = vld [vmem:[%s4030_s1 + $0x50] sm:$0xff]  ;;  %v777_v14 = vsel %vm80_vm0, %v709_v4, 0.0  ;;  %v694_v18 = vmul.f32 %v2855_v15, %v2855_v15 }
   0xc   :  { %2372 = vmatprep.mubr.msk.f32.mxu1 %vm80_vm0, %v2971_v45  ;;  %v622_v54 = vsel %vm80_vm0, %v572_v48, 0.0  ;;  %v619_v55 = vsel %vm80_vm0, %v571_v49, 0.0  ;;  %v3030_v0 = vld [vmem:[%s4030_s1 + $0xc0] sm:$0xff]  ;;  %v2420_v2 = vpack.c.bf16 %v3019_v60, %v3014_v59  ;;  %v3061_v12 = vld [vmem:[%s4030_s1 + $0x58] sm:$0xff]  ;;  %v3074_v21 = vld [vmem:[%s4030_s1 + $0xd0] sm:$0xff]  ;;  %v695_v28 = vmul.f32 %v2895_v25, %v2895_v25 }
   0xd   :  { %2407 = vmatpush3.bf16.xpose.msk.msra.mxu0 %vm2807_vm1, %v2402_v17  ;;  %v2468_v10 = vpack.c.bf16 %v3035_v1, %v3030_v0  ;;  %v729_v16 = vsel %vm80_vm0, %v693_v8, 0.0  ;;  %v710_v17 = vmul.f32 %v2874_v19, %v2874_v19  ;;  %v3079_v22 = vld [vmem:[%s4030_s1 + $0xd8] sm:$0xff]  ;;  %v711_v19 = vmul.f32 %v2925_v33, %v2925_v33  ;;  %v3102_v25 = vld [vmem:[%s4030_s1 + $0x60] sm:$0xff]  ;;  %v3107_v33 = vld [vmem:[%s4030_s1 + $0x68] sm:$0xff] }
   0xe   :  { %2455 = vmatpush3.bf16.xpose.msk.msra.mxu1 %vm2807_vm1, %v2450_v23  ;;  %2410 = vmatprep.subr.msk.bf16.mxu0 %vm2807_vm1, %v2408_v35  ;;  %v2426_v23 = vpack.c.bf16 %v3061_v12, %v3056_v11  ;;  %v732_v27 = vsel %vm80_vm0, %v694_v18, 0.0  ;;  %v2474_v29 = vpack.c.bf16 %v3079_v22, %v3074_v21  ;;  %v712_v30 = vmul.f32 %v2930_v34, %v2930_v34  ;;  %v3144_v49 = vld [vmem:[%s4030_s1 + $0x70] sm:$0xff]  ;;  %v3167_v56 = vld [vmem:[%s4030_s1 + $0xf8] sm:$0xff] }
   0xf   :  { %611 = vadd.xlane.f32.xlu1 %v610_v37  ;;  %608 = vadd.xlane.f32.xlu0 %v607_v38  ;;  %v780_v15 = vsel %vm80_vm0, %v710_v17, 0.0  ;;  %v735_v36 = vsel %vm80_vm0, %v695_v28, 0.0  ;;  %v696_v34 = vmul.f32 %v2900_v26, %v2900_v26  ;;  %v3118_v37 = vld [vmem:[%s4030_s1 + $0xe0] sm:$0xff]  ;;  %v3123_v38 = vld [vmem:[%s4030_s1 + $0xe8] sm:$0xff]  ;;  %v2432_v39 = vpack.c.bf16 %v3107_v33, %v3102_v25  ;;  %v3217_v3 = vld [vmem:[%s4029_s0 + $0x90] sm:$0xff] }
  0x10   :  { %2458 = vmatprep.subr.msk.bf16.mxu1 %vm2807_vm1, %v2456_v40  ;;  %v713_v26 = vmul.f32 %v2986_v50, %v2986_v50  ;;  %v2480_v48 = vpack.c.bf16 %v3123_v38, %v3118_v37  ;;  %v714_v53 = vmul.f32 %v2991_v51, %v2991_v51  ;;  %v715_v51 = vmul.f32 %v3030_v0, %v3030_v0 }
  0x11   :  { %v717_v4 = vmul.f32 %v3074_v21, %v3074_v21  ;;  %v701_v8 = vmul.f32 %v3056_v11, %v3056_v11  ;;  %v3212_v11 = vld [vmem:[%s4029_s0 + $0x88] sm:$0xff]  ;;  %v703_v18 = vmul.f32 %v3102_v25, %v3102_v25  ;;  %v3241_v21 = vld [vmem:[%s4029_s0 + $0xa0] sm:$0xff]  ;;  %vm883_vm5 = vcmask 326912  }
  0x12   :  { %v789_v50 = vsel %vm80_vm0, %v713_v26, 0.0  ;;  %v795_v63 = vsel %vm80_vm0, %v715_v51, 0.0  ;;  %v29_v26 = vld [vmem:[%s4029_s0 + $0x68] sm:$0xff]  ;;  %vm890_vm6 = vcmask 392512   ;;  %vm897_vm7 = vcmask 458112  }
  0x13   :  { %617 = vadd.xlane.f32.xlu1 %v616_v46  ;;  %614 = vadd.xlane.f32.xlu0 %v613_v47  ;;  %v738_v46 = vsel %vm80_vm0, %v696_v34, 0.0  ;;  %v697_v47 = vmul.f32 %v2961_v43, %v2961_v43  ;;  %v3149_v43 = vld [vmem:[%s4030_s1 + $0x78] sm:$0xff]  ;;  %v3314_v34 = vld [vmem:[%s4029_s0 + $0xc8] sm:$0xff]  ;;  %vm904_vm8 = vcmask 523712   ;;  %vm911_vm9 = vcmask 589312  }
  0x14   :  { %vm918_vm10 = vcmask 654912   ;;  %vm925_vm11 = vcmask 720512   ;;  %vm932_vm12 = vcmask 786112   ;;  %vm939_vm13 = vcmask 851712  }
  0x15   :  { %2413 = vmatpush3.bf16.xpose.msk.msra.mxu0 %vm2807_vm1, %v2408_v35  ;;  %v783_v35 = vsel %vm80_vm0, %v711_v19, 0.0  ;;  %v704_v19 = vmul.f32 %v3107_v33, %v3107_v33  ;;  %v722_v33 = vmul.f32 %v3167_v56, %v3167_v56  ;;  %vm946_vm14 = vcmask 917312  }
  0x16   :  { %2461 = vmatpush3.bf16.xpose.msk.msra.mxu1 %vm2807_vm1, %v2456_v40  ;;  %2416 = vmatprep.subr.msk.bf16.mxu0 %vm2807_vm1, %v2414_v52  ;;  %v786_v40 = vsel %vm80_vm0, %v712_v30, 0.0  ;;  %v3289_v30 = vld [vmem:[%s4029_s0 + $0xc0] sm:$0xff]  ;;  %vm953_vm15 = vcmask 982912  }
  0x17   :  { %623 = vadd.xlane.f32.xlu1 %v622_v54  ;;  %620 = vadd.xlane.f32.xlu0 %v619_v55  ;;  %v698_v54 = vmul.f32 %v2966_v44, %v2966_v44  ;;  %v3162_v55 = vld [vmem:[%s4030_s1 + $0xf0] sm:$0xff]  ;;  %v792_v44 = vsel %vm80_vm0, %v714_v53, 0.0  ;;  %v31_v53 = vld [vmem:[%s4029_s0 + $0x78] sm:$0xff] }
  0x18   :  { %2464 = vmatprep.subr.msk.bf16.mxu1 %vm2807_vm1, %v2462_v57  ;;  %v721_v28 = vmul.f32 %v3162_v55, %v3162_v55  ;;  %v578_v51 = vmul.f32 %v31_v53, %v31_v53 }
  0x19   :  { %v744_v58 = vsel %vm80_vm0, %v698_v54, 0.0  ;;  %v45_v54 = vld [vmem:[%s4029_s0 + $0xe8] sm:$0xff] }
  0x1b   :  { %727 = vadd.xlane.f32.xlu1 %v726_v61  ;;  %724 = vadd.xlane.f32.xlu0 %v723_v62  ;;  %v699_v61 = vmul.f32 %v3014_v59, %v3014_v59  ;;  %v2486_v62 = vpack.c.bf16 %v3167_v56, %v3162_v55  ;;  %v716_v59 = vmul.f32 %v3035_v1, %v3035_v1  ;;  %v753_v1 = vsel %vm80_vm0, %v701_v8, 0.0  ;;  %v46_v55 = vld [vmem:[%s4029_s0 + $0xf0] sm:$0xff] }
  0x1d   :  { %2419 = vmatpush3.bf16.xpose.msk.msra.mxu0 %vm2807_vm1, %v2414_v52  ;;  %v741_v52 = vsel %vm80_vm0, %v697_v47, 0.0  ;;  %v747_v0 = vsel %vm80_vm0, %v699_v61, 0.0  ;;  %v3344_v47 = vld [vmem:[%s4029_s0 + $0xe0] sm:$0xff]  ;;  %v579_v61 = vmul.f32 %v2971_v45, %v2971_v45 }
  0x1e   :  { %2467 = vmatpush3.bf16.xpose.msk.msra.mxu1 %vm2807_vm1, %v2462_v57  ;;  %2422 = vmatprep.subr.msk.bf16.mxu0 %vm2807_vm1, %v2420_v2  ;;  %v2438_v57 = vpack.c.bf16 %v3149_v43, %v3144_v49 }
  0x1f   :  { %775 = vadd.xlane.f32.xlu1 %v774_v5  ;;  %772 = vadd.xlane.f32.xlu0 %v771_v6  ;;  %v798_v5 = vsel %vm80_vm0, %v716_v59, 0.0 }
  0x20   :  { %2470 = vmatprep.subr.msk.bf16.mxu1 %vm2807_vm1, %v2468_v10 }
  0x23   :  { %778 = vadd.xlane.f32.xlu1 %v777_v14  ;;  %730 = vadd.xlane.f32.xlu0 %v729_v16  ;;  %v702_v14 = vmul.f32 %v3061_v12, %v3061_v12  ;;  %v719_v12 = vmul.f32 %v3118_v37, %v3118_v37  ;;  %v816_v37 = vsel %vm80_vm0, %v722_v33, 0.0 }
  0x25   :  { %2425 = vmatpush3.bf16.xpose.msk.msra.mxu0 %vm2807_vm1, %v2420_v2  ;;  %v700_v2 = vmul.f32 %v3019_v60, %v3019_v60  ;;  %v801_v60 = vsel %vm80_vm0, %v717_v4, 0.0  ;;  %v756_v17 = vsel %vm80_vm0, %v702_v14, 0.0 }
  0x26   :  { %2473 = vmatpush3.bf16.xpose.msk.msra.mxu1 %vm2807_vm1, %v2468_v10  ;;  %2428 = vmatprep.subr.msk.bf16.mxu0 %vm2807_vm1, %v2426_v23  ;;  %v718_v10 = vmul.f32 %v3079_v22, %v3079_v22  ;;  %v759_v22 = vsel %vm80_vm0, %v703_v18, 0.0 }
  0x27   :  { %781 = vadd.xlane.f32.xlu1 %v780_v15  ;;  %733 = vadd.xlane.f32.xlu0 %v732_v27  ;;  %v750_v6 = vsel %vm80_vm0, %v700_v2, 0.0  ;;  %v3265_v15 = vld [vmem:[%s4029_s0 + $0xb0] sm:$0xff]  ;;  %v762_v27 = vsel %vm80_vm0, %v704_v19, 0.0  ;;  %v643_v2 = vsel %vm80_vm0, %v579_v61, 0.0  ;;  %v592_v19 = vmul.f32 %v45_v54, %v45_v54 }
  0x28   :  { %2476 = vmatprep.subr.msk.bf16.mxu1 %vm2807_vm1, %v2474_v29  ;;  %v804_v16 = vsel %vm80_vm0, %v718_v10, 0.0 }
  0x2b   :  { %784 = vadd.xlane.f32.xlu1 %v783_v35  ;;  %736 = vadd.xlane.f32.xlu0 %v735_v36  ;;  %v706_v35 = vmul.f32 %v3149_v43, %v3149_v43  ;;  %v27_v36 = vld [vmem:[%s4029_s0 + $0x58] sm:$0xff]  ;;  %v576_v43 = vmul.f32 %v29_v26, %v29_v26 }
  0x2d   :  { %2431 = vmatpush3.bf16.xpose.msk.msra.mxu0 %vm2807_vm1, %v2426_v23  ;;  %v720_v23 = vmul.f32 %v3123_v38, %v3123_v38  ;;  %v768_v38 = vsel %vm80_vm0, %v706_v35, 0.0  ;;  %v634_v56 = vsel %vm80_vm0, %v576_v43, 0.0 }
  0x2e   :  { %2479 = vmatpush3.bf16.xpose.msk.msra.mxu1 %vm2807_vm1, %v2474_v29  ;;  %2434 = vmatprep.subr.msk.bf16.mxu0 %vm2807_vm1, %v2432_v39  ;;  %v705_v29 = vmul.f32 %v3144_v49, %v3144_v49 }
  0x2f   :  { %787 = vadd.xlane.f32.xlu1 %v786_v40  ;;  %739 = vadd.xlane.f32.xlu0 %v738_v46  ;;  %v28_v46 = vld [vmem:[%s4029_s0 + $0x60] sm:$0xff] }
  0x30   :  { %2482 = vmatprep.subr.msk.bf16.mxu1 %vm2807_vm1, %v2480_v48  ;;  %v765_v25 = vsel %vm80_vm0, %v705_v29, 0.0 }
  0x33   :  { %790 = vadd.xlane.f32.xlu1 %v789_v50  ;;  %742 = vadd.xlane.f32.xlu0 %v741_v52  ;;  %v575_v50 = vmul.f32 %v28_v46, %v28_v46  ;;  %v30_v52 = vld [vmem:[%s4029_s0 + $0x70] sm:$0xff] }
  0x35   :  { %2437 = vmatpush3.bf16.xpose.msk.msra.mxu0 %vm2807_vm1, %v2432_v39  ;;  %v574_v39 = vmul.f32 %v27_v36, %v27_v36 }
  0x36   :  { %2485 = vmatpush3.bf16.xpose.msk.msra.mxu1 %vm2807_vm1, %v2480_v48  ;;  %2440 = vmatprep.subr.msk.bf16.mxu0 %vm2807_vm1, %v2438_v57 }
  0x37   :  { %793 = vadd.xlane.f32.xlu1 %v792_v44  ;;  %745 = vadd.xlane.f32.xlu0 %v744_v58  ;;  %v628_v48 = vsel %vm80_vm0, %v574_v39, 0.0  ;;  %v577_v44 = vmul.f32 %v30_v52, %v30_v52  ;;  %v47_v58 = vld [vmem:[%s4029_s0 + $0xf8] sm:$0xff] }
  0x38   :  { %2488 = vmatprep.subr.msk.bf16.mxu1 %vm2807_vm1, %v2486_v62 }
  0x3b   :  { %796 = vadd.xlane.f32.xlu1 %v795_v63  ;;  %748 = vadd.xlane.f32.xlu0 %v747_v0  ;;  %v637_v63 = vsel %vm80_vm0, %v577_v44, 0.0  ;;  %v580_v0 = vmul.f32 %v3212_v11, %v3212_v11 }
  0x3d   :  { %2443 = vmatpush3.bf16.xpose.msk.msra.mxu0 %vm2807_vm1, %v2438_v57  ;;  %v631_v57 = vsel %vm80_vm0, %v575_v50, 0.0  ;;  %v646_v59 = vsel %vm80_vm0, %v580_v0, 0.0 }
  0x3e   :  { %2491 = vmatpush3.bf16.xpose.msk.msra.mxu1 %vm2807_vm1, %v2486_v62  ;;  %v640_v62 = vsel %vm80_vm0, %v578_v51, 0.0 }
  0x3f   :  { %799 = vadd.xlane.f32.xlu1 %v798_v5  ;;  %751 = vadd.xlane.f32.xlu0 %v750_v6  ;;  %v581_v5 = vmul.f32 %v3217_v3, %v3217_v3 }
  0x41   :  { %v649_v4 = vsel %vm80_vm0, %v581_v5, 0.0 }
  0x43   :  { %802 = vadd.xlane.f32.xlu1 %v801_v60  ;;  %754 = vadd.xlane.f32.xlu0 %v753_v1  ;;  %v583_v60 = vmul.f32 %v3241_v21, %v3241_v21 }
  0x44   :  { %2317 = vmatmul.mubr.msk.f32.vlgmr.msra.gmra.mrb[0].mxu0 %vm80_vm0, %v2845_v13  ;;  %v3236_v13 = vld [vmem:[%s4029_s0 + $0x98] sm:$0xff] }
  0x45   :  { %2373 = vmatmul.mubr.msk.f32.vlgmr.msra.gmra.mrb[0].mxu1 %vm80_vm0, %v3212_v11  ;;  %2319 = vmatprep.mubr.msk.f32.mxu0 %vm80_vm0, %v2826_v7  ;;  %v807_v7 = vsel %vm80_vm0, %v719_v12, 0.0  ;;  %v582_v45 = vmul.f32 %v3236_v13, %v3236_v13  ;;  %v655_v10 = vsel %vm80_vm0, %v583_v60, 0.0  ;;  %v585_v11 = vmul.f32 %v3265_v15, %v3265_v15 }
  0x46   :  { %2375 = vmatprep.mubr.msk.f32.mxu1 %vm80_vm0, %v3217_v3  ;;  %v587_v12 = vmul.f32 %v3289_v30, %v3289_v30 }
  0x47   :  { %805 = vadd.xlane.f32.xlu1 %v804_v16  ;;  %757 = vadd.xlane.f32.xlu0 %v756_v17  ;;  %v652_v6 = vsel %vm80_vm0, %v582_v45, 0.0  ;;  %v661_v16 = vsel %vm80_vm0, %v585_v11, 0.0  ;;  %v588_v17 = vmul.f32 %v3314_v34, %v3314_v34 }
  0x48   :  { %2320 = vmatmul.mubr.msk.f32.gmra.mrb[2].mxu0 %vm80_vm0, %v2834_v9  ;;  %v3260_v9 = vld [vmem:[%s4029_s0 + $0xa8] sm:$0xff] }
  0x49   :  { %2376 = vmatmul.mubr.msk.f32.gmra.mrb[2].mxu1 %vm80_vm0, %v3236_v13  ;;  %2322 = vmatprep.mubr.msk.f32.mxu0 %vm80_vm0, %v2890_v24  ;;  %v810_v24 = vsel %vm80_vm0, %v720_v23, 0.0  ;;  %v584_v8 = vmul.f32 %v3260_v9, %v3260_v9  ;;  %v670_v18 = vsel %vm80_vm0, %v588_v17, 0.0  ;;  %v667_v13 = vsel %vm80_vm0, %v587_v12, 0.0 }
  0x4a   :  { %2378 = vmatprep.mubr.msk.f32.mxu1 %vm80_vm0, %v3241_v21 }
  0x4b   :  { %808 = vadd.xlane.f32.xlu1 %v807_v7  ;;  %760 = vadd.xlane.f32.xlu0 %v759_v22  ;;  %v658_v1 = vsel %vm80_vm0, %v584_v8, 0.0 }
  0x4c   :  { %2323 = vmatmul.mubr.msk.f32.gmra.mrb[4].mxu0 %vm80_vm0, %v2879_v20  ;;  %v3284_v20 = vld [vmem:[%s4029_s0 + $0xb8] sm:$0xff] }
  0x4d   :  { %2379 = vmatmul.mubr.msk.f32.gmra.mrb[4].mxu1 %vm80_vm0, %v3260_v9  ;;  %2325 = vmatprep.mubr.msk.f32.mxu0 %vm80_vm0, %v2920_v32  ;;  %v813_v32 = vsel %vm80_vm0, %v721_v28, 0.0  ;;  %v586_v14 = vmul.f32 %v3284_v20, %v3284_v20  ;;  %v591_v9 = vmul.f32 %v3344_v47, %v3344_v47  ;;  %v593_v28 = vmul.f32 %v46_v55, %v46_v55 }
  0x4e   :  { %2381 = vmatprep.mubr.msk.f32.mxu1 %vm80_vm0, %v3265_v15  ;;  %v682_v15 = vsel %vm80_vm0, %v592_v19, 0.0 }
  0x4f   :  { %811 = vadd.xlane.f32.xlu1 %v810_v24  ;;  %763 = vadd.xlane.f32.xlu0 %v762_v27  ;;  %v664_v3 = vsel %vm80_vm0, %v586_v14, 0.0  ;;  %v679_v24 = vsel %vm80_vm0, %v591_v9, 0.0  ;;  %v594_v27 = vmul.f32 %v47_v58, %v47_v58 }
  0x50   :  { %2326 = vmatmul.mubr.msk.f32.gmra.mrb[6].mxu0 %vm80_vm0, %v2915_v31  ;;  %v26_v31 = vld [vmem:[%s4029_s0 + $0x50] sm:$0xff] }
  0x51   :  { %2382 = vmatmul.mubr.msk.f32.gmra.mrb[6].mxu1 %vm80_vm0, %v3284_v20  ;;  %2328 = vmatprep.mubr.msk.f32.mxu0 %vm80_vm0, %v2952_v42  ;;  %v3319_v42 = vld [vmem:[%s4029_s0 + $0xd0] sm:$0xff]  ;;  %v573_v40 = vmul.f32 %v26_v31, %v26_v31  ;;  %v688_v29 = vsel %vm80_vm0, %v594_v27, 0.0  ;;  %v685_v20 = vsel %vm80_vm0, %v593_v28, 0.0 }
  0x52   :  { %2384 = vmatprep.mubr.msk.f32.mxu1 %vm80_vm0, %v3289_v30  ;;  %v589_v7 = vmul.f32 %v3319_v42, %v3319_v42 }
  0x53   :  { %814 = vadd.xlane.f32.xlu1 %v813_v32  ;;  %766 = vadd.xlane.f32.xlu0 %v765_v25  ;;  %v625_v49 = vsel %vm80_vm0, %v573_v40, 0.0 }
  0x54   :  { %2329 = vmatmul.mubr.msk.f32.gmra.mrb[8].mxu0 %vm80_vm0, %v2947_v41  ;;  %v3339_v41 = vld [vmem:[%s4029_s0 + $0xd8] sm:$0xff]  ;;  %v673_v23 = vsel %vm80_vm0, %v589_v7, 0.0  ;;  %s2763_s0 = smov 0  }
  0x55   :  { %2385 = vmatmul.mubr.msk.f32.gmra.mrb[8].mxu1 %vm80_vm0, %v3314_v34  ;;  %2331 = vmatprep.mubr.msk.f32.mxu0 %vm80_vm0, %v26_v31  ;;  %v590_v21 = vmul.f32 %v3339_v41, %v3339_v41  ;;  %1318 = sst [smem:[#allocation3]] %s2763_s0 }
  0x56   :  { %2387 = vmatprep.mubr.msk.f32.mxu1 %vm80_vm0, %v3319_v42 }
  0x57   :  { %817 = vadd.xlane.f32.xlu1 %v816_v37  ;;  %769 = vadd.xlane.f32.xlu0 %v768_v38  ;;  %v676_v22 = vsel %vm80_vm0, %v590_v21, 0.0 }
  0x58   :  { %2332 = vmatmul.mubr.msk.f32.gmra.mrb[10].mxu0 %vm80_vm0, %v27_v36 }
  0x59   :  { %2388 = vmatmul.mubr.msk.f32.gmra.mrb[10].mxu1 %vm80_vm0, %v3339_v41  ;;  %2334 = vmatprep.mubr.msk.f32.mxu0 %vm80_vm0, %v28_v46 }
  0x5a   :  { %2390 = vmatprep.mubr.msk.f32.mxu1 %vm80_vm0, %v3344_v47 }
  0x5b   :  { %629 = vadd.xlane.f32.xlu1 %v628_v48  ;;  %626 = vadd.xlane.f32.xlu0 %v625_v49 }
  0x5c   :  { %2335 = vmatmul.mubr.msk.f32.gmra.mrb[12].mxu0 %vm80_vm0, %v29_v26 }
  0x5d   :  { %2391 = vmatmul.mubr.msk.f32.gmra.mrb[12].mxu1 %vm80_vm0, %v45_v54  ;;  %2337 = vmatprep.mubr.msk.f32.mxu0 %vm80_vm0, %v30_v52 }
  0x5e   :  { %2393 = vmatprep.mubr.msk.f32.mxu1 %vm80_vm0, %v46_v55 }
  0x5f   :  { %635 = vadd.xlane.f32.xlu1 %v634_v56  ;;  %632 = vadd.xlane.f32.xlu0 %v631_v57 }
  0x60   :  { %2338 = vmatmul.mubr.msk.f32.gmra.mrb[14].mxu0 %vm80_vm0, %v31_v53 }
  0x61   :  { %2394 = vmatmul.mubr.msk.f32.gmra.mrb[14].mxu1 %vm80_vm0, %v47_v58  ;;  %vm960_vm0 = vcmask 1048512  }
  0x63   :  { %641 = vadd.xlane.f32.xlu1 %v640_v62  ;;  %638 = vadd.xlane.f32.xlu0 %v637_v63 }
  0x67   :  { %647 = vadd.xlane.f32.xlu1 %v646_v59  ;;  %644 = vadd.xlane.f32.xlu0 %v643_v2  ;;  %v851_v59 = vlaneseq }
  0x69   :  { %v3481_v5 = vand.u32 127, %v851_v59  ;;  %v3487_v8 = vshrl.u32 %v851_v59, 7 }
  0x6b   :  { %653 = vadd.xlane.f32.xlu1 %v652_v6  ;;  %650 = vadd.xlane.f32.xlu0 %v649_v4  ;;  %v857_v60 = vadd.s32 4294967288, %v3481_v5  ;;  %v864_v14 = vadd.s32 4294967280, %v3481_v5  ;;  %v871_v12 = vadd.s32 4294967272, %v3481_v5 }
  0x6d   :  { %v860_v11 = vsub.s32 %v857_v60, %v3487_v8  ;;  %v867_v21 = vsub.s32 %v864_v14, %v3487_v8  ;;  %v892_v14 = vadd.s32 4294967248, %v3481_v5 }
  0x6f   :  { %659 = vadd.xlane.f32.xlu1 %v658_v1  ;;  %656 = vadd.xlane.f32.xlu0 %v655_v10 }
  0x73   :  { %665 = vadd.xlane.f32.xlu1 %v664_v3  ;;  %662 = vadd.xlane.f32.xlu0 %v661_v16  ;;  %v855_v3 = vsub.s32 %v3481_v5, %v3487_v8 }
  0x77   :  { %671 = vadd.xlane.f32.xlu1 %v670_v18  ;;  %668 = vadd.xlane.f32.xlu0 %v667_v13 }
  0x7b   :  { %677 = vadd.xlane.f32.xlu1 %v676_v22  ;;  %674 = vadd.xlane.f32.xlu0 %v673_v23  ;;  %v878_v23 = vadd.s32 4294967264, %v3481_v5 }
  0x7f   :  { %683 = vadd.xlane.f32.xlu1 %v682_v15  ;;  %680 = vadd.xlane.f32.xlu0 %v679_v24  ;;  %v874_v24 = vsub.s32 %v871_v12, %v3487_v8 }
  0x83   :  { %689 = vadd.xlane.f32.xlu1 %v688_v29  ;;  %686 = vadd.xlane.f32.xlu0 %v685_v20  ;;  %v885_v20 = vadd.s32 4294967256, %v3481_v5 }
  0x94   :  { %v3421_v30 = vpop.xlane.xlu1 %602  ;;  %v3423_v32 = vpop.xlane.xlu0 %596 }
  0x98   :  { %v3425_v25 = vpop.xlane.xlu1 %605  ;;  %v3427_v33 = vpop.xlane.xlu0 %599 }
  0x9c   :  { %v3429_v35 = vpop.xlane.xlu1 %611  ;;  %v3431_v31 = vpop.xlane.xlu0 %608 }
  0xa0   :  { %v3433_v36 = vpop.xlane.xlu1 %617  ;;  %v3435_v34 = vpop.xlane.xlu0 %614 }
  0xa4   :  { %v3437_v42 = vpop.xlane.xlu1 %623  ;;  %v3439_v37 = vpop.xlane.xlu0 %620 }
  0xa8   :  { %v728_v38 = vpop.xlane.xlu1 %727  ;;  %v725_v39 = vpop.xlane.xlu0 %724 }
  0xa9   :  { %v861_v7 = vrot.slane %v728_v38, %v860_v11  ;;  %v856_v22 = vrot.slane %v725_v39, %v855_v3  ;;  %v881_v38 = vsub.s32 %v878_v23, %v3487_v8 }
  0xab   :  { %v863_v29 = vsel %vm862_vm2, %v861_v7, %v856_v22  ;;  %v895_v7 = vsub.s32 %v892_v14, %v3487_v8 }
  0xac   :  { %v776_v40 = vpop.xlane.xlu1 %775  ;;  %v773_v46 = vpop.xlane.xlu0 %772 }
  0xad   :  { %v969_v18 = vrot.slane %v776_v40, %v860_v11  ;;  %v965_v13 = vrot.slane %v773_v46, %v855_v3  ;;  %v888_v11 = vsub.s32 %v885_v20, %v3487_v8 }
  0xaf   :  { %v970_v27 = vsel %vm862_vm2, %v969_v18, %v965_v13 }
  0xb0   :  { %v779_v26 = vpop.xlane.xlu1 %778  ;;  %v731_v41 = vpop.xlane.xlu0 %730 }
  0xb1   :  { %v974_v15 = vrot.slane %v779_v26, %v867_v21  ;;  %v868_v28 = vrot.slane %v731_v41, %v867_v21  ;;  %v899_v21 = vadd.s32 4294967240, %v3481_v5 }
  0xb3   :  { %v975_v59 = vsel %vm869_vm3, %v974_v15, %v970_v27  ;;  %v870_v26 = vsel %vm869_vm3, %v868_v28, %v863_v29  ;;  %v906_v15 = vadd.s32 4294967232, %v3481_v5  ;;  %v902_v28 = vsub.s32 %v899_v21, %v3487_v8 }
  0xb4   :  { %v3441_v47 = vpop.xlane.xlu1 %781  ;;  %v3443_v48 = vpop.xlane.xlu0 %733 }
  0xb5   :  { %v979_v40 = vrot.slane %v3441_v47, %v874_v24  ;;  %v875_v60 = vrot.slane %v3443_v48, %v874_v24 }
  0xb7   :  { %v980_v3 = vsel %vm876_vm4, %v979_v40, %v975_v59  ;;  %v877_v13 = vsel %vm876_vm4, %v875_v60, %v870_v26  ;;  %v913_v40 = vadd.s32 4294967224, %v3481_v5 }
  0xb8   :  { %v3445_v49 = vpop.xlane.xlu1 %784  ;;  %v3447_v43 = vpop.xlane.xlu0 %736 }
  0xb9   :  { %v984_v41 = vrot.slane %v3445_v49, %v881_v38  ;;  %v882_v47 = vrot.slane %v3447_v43, %v881_v38  ;;  %v909_v38 = vsub.s32 %v906_v15, %v3487_v8 }
  0xbb   :  { %v985_v22 = vsel %vm883_vm5, %v984_v41, %v980_v3  ;;  %v884_v23 = vsel %vm883_vm5, %v882_v47, %v877_v13  ;;  %v920_v41 = vadd.s32 4294967216, %v3481_v5 }
  0xbc   :  { %v3449_v50 = vpop.xlane.xlu1 %787  ;;  %v3451_v52 = vpop.xlane.xlu0 %739 }
  0xbd   :  { %v989_v48 = vrot.slane %v3449_v50, %v888_v11  ;;  %v889_v49 = vrot.slane %v3451_v52, %v888_v11  ;;  %v916_v11 = vsub.s32 %v913_v40, %v3487_v8  ;;  %v955_v40 = vadd.s32 4294967176, %v3481_v5 }
  0xbf   :  { %v990_v29 = vsel %vm890_vm6, %v989_v48, %v985_v22  ;;  %v891_v20 = vsel %vm890_vm6, %v889_v49, %v884_v23  ;;  %v927_v48 = vadd.s32 4294967208, %v3481_v5  ;;  %v934_v23 = vadd.s32 4294967200, %v3481_v5 }
  0xc0   :  { %v3453_v53 = vpop.xlane.xlu1 %790  ;;  %v3455_v54 = vpop.xlane.xlu0 %742 }
  0xc1   :  { %v994_v27 = vrot.slane %v3453_v53, %v895_v7  ;;  %v896_v50 = vrot.slane %v3455_v54, %v895_v7  ;;  %v923_v7 = vsub.s32 %v920_v41, %v3487_v8 }
  0xc3   :  { %v995_v26 = vsel %vm897_vm7, %v994_v27, %v990_v29  ;;  %v898_v14 = vsel %vm897_vm7, %v896_v50, %v891_v20  ;;  %v930_v27 = vsub.s32 %v927_v48, %v3487_v8  ;;  %v948_v20 = vadd.s32 4294967184, %v3481_v5 }
  0xc4   :  { %v3457_v55 = vpop.xlane.xlu1 %793  ;;  %v3459_v56 = vpop.xlane.xlu0 %745 }
  0xc5   :  { %v999_v52 = vrot.slane %v3457_v55, %v902_v28  ;;  %v903_v53 = vrot.slane %v3459_v56, %v902_v28  ;;  %v941_v28 = vadd.s32 4294967192, %v3481_v5 }
  0xc7   :  { %v1000_v3 = vsel %vm904_vm8, %v999_v52, %v995_v26  ;;  %v905_v21 = vsel %vm904_vm8, %v903_v53, %v898_v14  ;;  %v944_v53 = vsub.s32 %v941_v28, %v3487_v8 }
  0xc8   :  { %v3461_v57 = vpop.xlane.xlu1 %796  ;;  %v3463_v51 = vpop.xlane.xlu0 %748 }
  0xc9   :  { %v1004_v54 = vrot.slane %v3461_v57, %v909_v38  ;;  %v910_v55 = vrot.slane %v3463_v51, %v909_v38  ;;  %v937_v38 = vsub.s32 %v934_v23, %v3487_v8 }
  0xcb   :  { %v1005_v22 = vsel %vm911_vm9, %v1004_v54, %v1000_v3  ;;  %v912_v49 = vsel %vm911_vm9, %v910_v55, %v905_v21 }
  0xcc   :  { %v3465_v44 = vpop.xlane.xlu1 %799  ;;  %v3467_v58 = vpop.xlane.xlu0 %751 }
  0xcd   :  { %v1009_v56 = vrot.slane %v3465_v44, %v916_v11  ;;  %v917_v57 = vrot.slane %v3467_v58, %v916_v11  ;;  %v958_v11 = vsub.s32 %v955_v40, %v3487_v8 }
  0xcf   :  { %v1010_v44 = vsel %vm918_vm10, %v1009_v56, %v1005_v22  ;;  %v919_v58 = vsel %vm918_vm10, %v917_v57, %v912_v49 }
  0xd0   :  { %v3469_v61 = vpop.xlane.xlu1 %802  ;;  %v3471_v62 = vpop.xlane.xlu0 %754 }
  0xd1   :  { %v1014_v15 = vrot.slane %v3469_v61, %v923_v7  ;;  %v924_v50 = vrot.slane %v3471_v62, %v923_v7  ;;  %v951_v62 = vsub.s32 %v948_v20, %v3487_v8 }
  0xd3   :  { %v1015_v61 = vsel %vm925_vm11, %v1014_v15, %v1010_v44  ;;  %v926_v41 = vsel %vm925_vm11, %v924_v50, %v919_v58 }
  0xd4   :  { %v3473_v63 = vpop.xlane.xlu1 %805  ;;  %v3475_v0 = vpop.xlane.xlu0 %757 }
  0xd5   :  { %v1019_v52 = vrot.slane %v3473_v63, %v930_v27  ;;  %v931_v26 = vrot.slane %v3475_v0, %v930_v27 }
  0xd7   :  { %v1020_v5 = vsel %vm932_vm12, %v1019_v52, %v1015_v61  ;;  %v933_v55 = vsel %vm932_vm12, %v931_v26, %v926_v41 }
  0xd8   :  { %v3477_v2 = vpop.xlane.xlu1 %808  ;;  %v3479_v45 = vpop.xlane.xlu0 %760 }
  0xd9   :  { %v1024_v54 = vrot.slane %v3477_v2, %v937_v38  ;;  %v938_v63 = vrot.slane %v3479_v45, %v937_v38 }
  0xdb   :  { %v1025_v56 = vsel %vm939_vm13, %v1024_v54, %v1020_v5  ;;  %v940_v22 = vsel %vm939_vm13, %v938_v63, %v933_v55 }
  0xdc   :  { %v3483_v6 = vpop.xlane.xlu1 %811  ;;  %v3485_v4 = vpop.xlane.xlu0 %763 }
  0xdd   :  { %v945_v21 = vrot.slane %v3485_v4, %v944_v53  ;;  %v1029_v0 = vrot.slane %v3483_v6, %v944_v53 }
  0xdf   :  { %v947_v8 = vsel %vm946_vm14, %v945_v21, %v940_v22  ;;  %v1030_v49 = vsel %vm946_vm14, %v1029_v0, %v1025_v56 }
  0xe0   :  { %v3490_v1 = vpop.xlane.xlu1 %814  ;;  %v3492_v10 = vpop.xlane.xlu0 %766 }
  0xe1   :  { %v952_v48 = vrot.slane %v3492_v10, %v951_v62  ;;  %v1034_v57 = vrot.slane %v3490_v1, %v951_v62 }
  0xe3   :  { %v954_v23 = vsel %vm953_vm15, %v952_v48, %v947_v8  ;;  %v1035_v27 = vsel %vm953_vm15, %v1034_v57, %v1030_v49 }
  0xe4   :  { %v3498_v16 = vpop.xlane.xlu1 %817  ;;  %v3500_v17 = vpop.xlane.xlu0 %769 }
  0xe5   :  { %v959_v7 = vrot.slane %v3500_v17, %v958_v11  ;;  %v1039_v4 = vrot.slane %v3498_v16, %v958_v11 }
  0xe7   :  { %v961_v15 = vsel %vm960_vm0, %v959_v7, %v954_v23  ;;  %v1040_v28 = vsel %vm960_vm0, %v1039_v4, %v1035_v27 }
  0xe8   :  { %v3505_v19 = vpop.xlane.xlu1 %629  ;;  %v3507_v9 = vpop.xlane.xlu0 %626  ;;  %v1062_v10 = vadd.f32 %v961_v15, %v3427_v33  ;;  %v1061_v44 = vadd.f32 %v961_v15, %v3423_v32  ;;  %v1064_v20 = vadd.f32 %v961_v15, %v3425_v25  ;;  %v1063_v58 = vadd.f32 %v961_v15, %v3421_v30 }
  0xe9   :  { %v3586_v17 = vadd.f32 %v961_v15, %v3505_v19  ;;  %v3589_v50 = vadd.f32 %v961_v15, %v3507_v9  ;;  %v3594_v16 = vadd.f32 %v961_v15, %v3429_v35  ;;  %v3597_v40 = vadd.f32 %v961_v15, %v3431_v31 }
  0xea   :  { %v3600_v33 = vadd.f32 %v961_v15, %v3433_v36  ;;  %v3603_v32 = vadd.f32 %v961_v15, %v3435_v34  ;;  %v3612_v30 = vadd.f32 %v961_v15, %v3437_v42  ;;  %v3615_v25 = vadd.f32 %v961_v15, %v3439_v37 }
  0xec   :  { %v3513_v39 = vpop.xlane.xlu1 %635  ;;  %v3515_v46 = vpop.xlane.xlu0 %632 }
  0xed   :  { %v3606_v19 = vadd.f32 %v961_v15, %v3513_v39  ;;  %v3609_v9 = vadd.f32 %v961_v15, %v3515_v46 }
  0xf0   :  { %v3522_v12 = vpop.xlane.xlu1 %641  ;;  %v3524_v18 = vpop.xlane.xlu0 %638 }
  0xf1   :  { %v3618_v35 = vadd.f32 %v961_v15, %v3522_v12  ;;  %v3621_v31 = vadd.f32 %v961_v15, %v3524_v18 }
  0xf4   :  { %v3531_v43 = vpop.xlane.xlu1 %647  ;;  %v3533_v24 = vpop.xlane.xlu0 %644 }
  0xf5   :  { %v1078_v36 = vadd.f32 %v1040_v28, %v3531_v43  ;;  %v1077_v34 = vadd.f32 %v1040_v28, %v3533_v24 }
  0xf8   :  { %v3541_v59 = vpop.xlane.xlu1 %653  ;;  %v3543_v60 = vpop.xlane.xlu0 %650 }
  0xf9   :  { %v1080_v39 = vadd.f32 %v1040_v28, %v3541_v59  ;;  %v1079_v46 = vadd.f32 %v1040_v28, %v3543_v60 }
  0xfc   :  { %v3550_v47 = vpop.xlane.xlu1 %659  ;;  %v3552_v13 = vpop.xlane.xlu0 %656 }
  0xfd   :  { %v3628_v42 = vadd.f32 %v1040_v28, %v3550_v47  ;;  %v3631_v37 = vadd.f32 %v1040_v28, %v3552_v13 }
 0x100   :  { %v3559_v51 = vpop.xlane.xlu1 %665  ;;  %v3564_v29 = vpop.xlane.xlu0 %662 }
 0x101   :  { %v3634_v38 = vadd.f32 %v1040_v28, %v3559_v51  ;;  %v3637_v18 = vadd.f32 %v1040_v28, %v3564_v29 }
 0x104   :  { %v672_v14 = vpop.xlane.xlu1 %671  ;;  %v669_v3 = vpop.xlane.xlu0 %668 }
 0x105   :  { %v3639_v43 = vadd.f32 %v1040_v28, %v672_v14  ;;  %v3641_v60 = vadd.f32 %v1040_v28, %v669_v3 }
 0x108   :  { %v678_v2 = vpop.xlane.xlu1 %677  ;;  %v675_v45 = vpop.xlane.xlu0 %674 }
 0x109   :  { %v3643_v47 = vadd.f32 %v1040_v28, %v678_v2  ;;  %v3645_v62 = vadd.f32 %v1040_v28, %v675_v45 }
 0x10c   :  { %v684_v6 = vpop.xlane.xlu1 %683  ;;  %v681_v1 = vpop.xlane.xlu0 %680 }
 0x10d   :  { %v3647_v51 = vadd.f32 %v1040_v28, %v684_v6  ;;  %v3649_v11 = vadd.f32 %v1040_v28, %v681_v1 }
 0x110   :  { %v690_v52 = vpop.xlane.xlu1 %689  ;;  %v687_v26 = vpop.xlane.xlu0 %686 }
 0x111   :  { %v3651_v14 = vadd.f32 %v1040_v28, %v690_v52  ;;  %v3653_v55 = vadd.f32 %v1040_v28, %v687_v26 }
 0x117   :  { %v2318_v12 = vpop.f32.mrb[0].mxu0 }
 0x118   :  { %v1094_v24 = vmul.f32 2.0, %v2318_v12  ;;  %v2374_v59 = vpop.f32.mrb[0].mxu1  ;;  %v243_v61 = vpop.f32.mrb[1].mxu0 }
 0x119   :  { %v1110_v13 = vmul.f32 2.0, %v2374_v59  ;;  %v1093_v53 = vmul.f32 2.0, %v243_v61  ;;  %v484_v41 = vpop.f32.mrb[1].mxu1 }
 0x11a   :  { %v1126_v54 = vsub.f32 %v1062_v10, %v1094_v24  ;;  %v1109_v29 = vmul.f32 2.0, %v484_v41 }
 0x11b   :  { %v1142_v5 = vsub.f32 %v1078_v36, %v1110_v13  ;;  %v1125_v63 = vsub.f32 %v1061_v44, %v1093_v53  ;;  %v2321_v3 = vpop.f32.mrb[2].mxu0 }
 0x11c   :  { %1158 = vst [vmem:[#allocation6 + $0x8] sm:$0xff] %v1126_v54  ;;  %v1190_v21 = vmul.f32 -1.0, %v1126_v54  ;;  %v1141_v0 = vsub.f32 %v1077_v34, %v1109_v29  ;;  %v1096_v48 = vmul.f32 2.0, %v2321_v3  ;;  %v2377_v56 = vpop.f32.mrb[2].mxu1  ;;  %v253_v7 = vpop.f32.mrb[3].mxu0 }
 0x11d   :  { %1174 = vst [vmem:[#allocation6 + $0x88] sm:$0xff] %v1142_v5  ;;  %v1206_v2 = vmul.f32 -1.0, %v1142_v5  ;;  %1157 = vst [vmem:[#allocation6] sm:$0xff] %v1125_v63  ;;  %v1189_v22 = vmul.f32 -1.0, %v1125_v63  ;;  %v1112_v8 = vmul.f32 2.0, %v2377_v56  ;;  %v1095_v57 = vmul.f32 2.0, %v253_v7 }
 0x11e   :  { %v494_v45 = vpop.f32.mrb[3].mxu1  ;;  %v1223_v49 = vmul.f32 1.442695, %v1190_v21  ;;  %1173 = vst [vmem:[#allocation6 + $0x80] sm:$0xff] %v1141_v0  ;;  %v1205_v23 = vmul.f32 -1.0, %v1141_v0  ;;  %v1128_v4 = vsub.f32 %v1064_v20, %v1096_v48 }
 0x11f   :  { %v1111_v15 = vmul.f32 2.0, %v494_v45  ;;  %v1255_v27 = vmul.f32 1.442695, %v1206_v2  ;;  %v1221_v6 = vmul.f32 1.442695, %v1189_v22  ;;  %v1144_v28 = vsub.f32 %v1080_v39, %v1112_v8  ;;  %v2324_v44 = vpop.f32.mrb[4].mxu0 }
 0x120   :  { %v1127_v10 = vsub.f32 %v1063_v58, %v1095_v57  ;;  %2507 = vpow2.f32 %v1223_v49  ;;  %v1253_v1 = vmul.f32 1.442695, %v1205_v23  ;;  %1160 = vst [vmem:[#allocation6 + $0x18] sm:$0xff] %v1128_v4  ;;  %v1192_v36 = vmul.f32 -1.0, %v1128_v4  ;;  %v2380_v52 = vpop.f32.mrb[4].mxu1  ;;  %v263_v12 = vpop.f32.mrb[5].mxu0 }
 0x121   :  { %v1143_v34 = vsub.f32 %v1079_v46, %v1111_v15  ;;  %2509 = vpow2.f32 %v1255_v27  ;;  %1176 = vst [vmem:[#allocation6 + $0x98] sm:$0xff] %v1144_v28  ;;  %v1208_v24 = vmul.f32 -1.0, %v1144_v28  ;;  %v1098_v61 = vmul.f32 2.0, %v2324_v44  ;;  %v504_v20 = vpop.f32.mrb[5].mxu1 }
 0x122   :  { %1159 = vst [vmem:[#allocation6 + $0x10] sm:$0xff] %v1127_v10  ;;  %v1191_v59 = vmul.f32 -1.0, %v1127_v10  ;;  %2511 = vpow2.f32 %v1221_v6  ;;  %v1227_v26 = vmul.f32 1.442695, %v1192_v36  ;;  %v1114_v58 = vmul.f32 2.0, %v2380_v52 }
 0x123   :  { %1175 = vst [vmem:[#allocation6 + $0x90] sm:$0xff] %v1143_v34  ;;  %v1207_v39 = vmul.f32 -1.0, %v1143_v34  ;;  %2513 = vpow2.f32 %v1253_v1  ;;  %v1259_v13 = vmul.f32 1.442695, %v1208_v24  ;;  %v1130_v41 = vsub.f32 %v3594_v16, %v1098_v61  ;;  %v2327_v46 = vpop.f32.mrb[6].mxu0 }
 0x124   :  { %v1225_v53 = vmul.f32 1.442695, %v1191_v59  ;;  %2515 = vpow2.f32 %v1227_v26  ;;  %v1146_v29 = vsub.f32 %v3628_v42, %v1114_v58  ;;  %v1097_v5 = vmul.f32 2.0, %v263_v12  ;;  %v2383_v63 = vpop.f32.mrb[6].mxu1  ;;  %v273_v3 = vpop.f32.mrb[7].mxu0 }
 0x125   :  { %v1257_v54 = vmul.f32 1.442695, %v1207_v39  ;;  %2517 = vpow2.f32 %v1259_v13  ;;  %1162 = vst [vmem:[#allocation6 + $0x28] sm:$0xff] %v1130_v41  ;;  %v1194_v21 = vmul.f32 -1.0, %v1130_v41  ;;  %v1113_v0 = vmul.f32 2.0, %v504_v20  ;;  %v514_v56 = vpop.f32.mrb[7].mxu1 }
 0x126   :  { %v1100_v48 = vmul.f32 2.0, %v2327_v46  ;;  %2519 = vpow2.f32 %v1225_v53  ;;  %1178 = vst [vmem:[#allocation6 + $0xa8] sm:$0xff] %v1146_v29  ;;  %v1210_v7 = vmul.f32 -1.0, %v1146_v29  ;;  %v1129_v2 = vsub.f32 %v3597_v40, %v1097_v5 }
 0x127   :  { %v1116_v16 = vmul.f32 2.0, %v2383_v63  ;;  %2521 = vpow2.f32 %v1257_v54  ;;  %v1231_v22 = vmul.f32 1.442695, %v1194_v21  ;;  %v1145_v8 = vsub.f32 %v3631_v37, %v1113_v0  ;;  %v2330_v57 = vpop.f32.mrb[8].mxu0 }
 0x128   :  { %v1132_v42 = vsub.f32 %v3600_v33, %v1100_v48  ;;  %v1263_v45 = vmul.f32 1.442695, %v1210_v7  ;;  %1161 = vst [vmem:[#allocation6 + $0x20] sm:$0xff] %v1129_v2  ;;  %v1193_v49 = vmul.f32 -1.0, %v1129_v2  ;;  %v1099_v4 = vmul.f32 2.0, %v273_v3  ;;  %v2386_v15 = vpop.f32.mrb[8].mxu1 }
 0x129   :  { %v1148_v23 = vsub.f32 %v3634_v38, %v1116_v16  ;;  %v283_v27 = vpop.f32.mrb[9].mxu0  ;;  %2523 = vpow2.f32 %v1231_v22  ;;  %1177 = vst [vmem:[#allocation6 + $0xa0] sm:$0xff] %v1145_v8  ;;  %v1209_v6 = vmul.f32 -1.0, %v1145_v8  ;;  %v1115_v28 = vmul.f32 2.0, %v514_v56  ;;  %v524_v10 = vpop.f32.mrb[9].mxu1 }
 0x12a   :  { %1164 = vst [vmem:[#allocation6 + $0x38] sm:$0xff] %v1132_v42  ;;  %v1196_v40 = vmul.f32 -1.0, %v1132_v42  ;;  %v2508_v44 = vpop.eup %2507  ;;  %2525 = vpow2.f32 %v1263_v45  ;;  %v1229_v37 = vmul.f32 1.442695, %v1193_v49  ;;  %v1131_v1 = vsub.f32 %v3603_v32, %v1099_v4 }
 0x12b   :  { %1180 = vst [vmem:[#allocation6 + $0xb8] sm:$0xff] %v1148_v23  ;;  %v1212_v33 = vmul.f32 -1.0, %v1148_v23  ;;  %v2510_v36 = vpop.eup %2509  ;;  %1286 = vst [vmem:[#allocation2 + $0x8] sm:$0xff] %v2508_v44  ;;  %v1261_v38 = vmul.f32 1.442695, %v1209_v6  ;;  %v1147_v52 = vsub.f32 %v3637_v18, %v1115_v28  ;;  %v1102_v12 = vmul.f32 2.0, %v2330_v57 }
 0x12c   :  { %v1235_v34 = vmul.f32 1.442695, %v1196_v40  ;;  %v2333_v24 = vpop.f32.mrb[10].mxu0  ;;  %v2512_v59 = vpop.eup %2511  ;;  %1302 = vst [vmem:[#allocation2 + $0x88] sm:$0xff] %v2510_v36  ;;  %2527 = vpow2.f32 %v1229_v37  ;;  %1163 = vst [vmem:[#allocation6 + $0x30] sm:$0xff] %v1131_v1  ;;  %v1195_v20 = vmul.f32 -1.0, %v1131_v1 }
 0x12d   :  { %v1267_v61 = vmul.f32 1.442695, %v1212_v33  ;;  %v1118_v26 = vmul.f32 2.0, %v2386_v15  ;;  %v2389_v39 = vpop.f32.mrb[10].mxu1  ;;  %v293_v58 = vpop.f32.mrb[11].mxu0  ;;  %1285 = vst [vmem:[#allocation2] sm:$0xff] %v2512_v59  ;;  %2529 = vpow2.f32 %v1261_v38  ;;  %v1134_v53 = vsub.f32 %v3612_v30, %v1102_v12 }
 0x12e   :  { %v2514_v13 = vpop.eup %2513  ;;  %1179 = vst [vmem:[#allocation6 + $0xb0] sm:$0xff] %v1147_v52  ;;  %v1211_v32 = vmul.f32 -1.0, %v1147_v52  ;;  %v1101_v41 = vmul.f32 2.0, %v283_v27  ;;  %v534_v18 = vpop.f32.mrb[11].mxu1  ;;  %2531 = vpow2.f32 %v1235_v34  ;;  %v1233_v54 = vmul.f32 1.442695, %v1195_v20 }
 0x12f   :  { %v2516_v46 = vpop.eup %2515  ;;  %1301 = vst [vmem:[#allocation2 + $0x80] sm:$0xff] %v2514_v13  ;;  %v1150_v29 = vsub.f32 %v3639_v43, %v1118_v26  ;;  %v1117_v5 = vmul.f32 2.0, %v524_v10  ;;  %2533 = vpow2.f32 %v1267_v61  ;;  %1166 = vst [vmem:[#allocation6 + $0x48] sm:$0xff] %v1134_v53  ;;  %v1198_v21 = vmul.f32 -1.0, %v1134_v53  ;;  %v2336_v48 = vpop.f32.mrb[12].mxu0 }
 0x130   :  { %v2518_v63 = vpop.eup %2517  ;;  %1288 = vst [vmem:[#allocation2 + $0x18] sm:$0xff] %v2516_v46  ;;  %v1265_v3 = vmul.f32 1.442695, %v1211_v32  ;;  %v1133_v0 = vsub.f32 %v3615_v25, %v1101_v41  ;;  %2535 = vpow2.f32 %v1233_v54  ;;  %v1104_v2 = vmul.f32 2.0, %v2333_v24  ;;  %v2392_v16 = vpop.f32.mrb[12].mxu1 }
 0x131   :  { %v2520_v56 = vpop.eup %2519  ;;  %1304 = vst [vmem:[#allocation2 + $0x98] sm:$0xff] %v2518_v63  ;;  %1182 = vst [vmem:[#allocation6 + $0xc8] sm:$0xff] %v1150_v29  ;;  %v1214_v30 = vmul.f32 -1.0, %v1150_v29  ;;  %v1149_v7 = vsub.f32 %v3641_v60, %v1117_v5  ;;  %v303_v43 = vpop.f32.mrb[13].mxu0  ;;  %v1239_v8 = vmul.f32 1.442695, %v1198_v21 }
 0x132   :  { %v2522_v22 = vpop.eup %2521  ;;  %1287 = vst [vmem:[#allocation2 + $0x10] sm:$0xff] %v2520_v56  ;;  %2537 = vpow2.f32 %v1265_v3  ;;  %1165 = vst [vmem:[#allocation6 + $0x40] sm:$0xff] %v1133_v0  ;;  %v1197_v42 = vmul.f32 -1.0, %v1133_v0  ;;  %v1120_v57 = vmul.f32 2.0, %v2389_v39  ;;  %v544_v45 = vpop.f32.mrb[13].mxu1  ;;  %v1136_v23 = vsub.f32 %v3586_v17, %v1104_v2 }
 0x133   :  { %1303 = vst [vmem:[#allocation2 + $0x90] sm:$0xff] %v2522_v22  ;;  %v1271_v25 = vmul.f32 1.442695, %v1214_v30  ;;  %1181 = vst [vmem:[#allocation6 + $0xc0] sm:$0xff] %v1149_v7  ;;  %v1213_v49 = vmul.f32 -1.0, %v1149_v7  ;;  %v1103_v4 = vmul.f32 2.0, %v293_v58  ;;  %v2524_v15 = vpop.eup %2523  ;;  %2539 = vpow2.f32 %v1239_v8 }
 0x134   :  { %v1237_v60 = vmul.f32 1.442695, %v1197_v42  ;;  %v1152_v27 = vsub.f32 %v3643_v47, %v1120_v57  ;;  %v1119_v6 = vmul.f32 2.0, %v534_v18  ;;  %v2339_v40 = vpop.f32.mrb[14].mxu0  ;;  %v2526_v28 = vpop.eup %2525  ;;  %1290 = vst [vmem:[#allocation2 + $0x28] sm:$0xff] %v2524_v15  ;;  %1168 = vst [vmem:[#allocation6 + $0x58] sm:$0xff] %v1136_v23 }
 0x135   :  { %2541 = vpow2.f32 %v1271_v25  ;;  %v1269_v10 = vmul.f32 1.442695, %v1213_v49  ;;  %v1200_v44 = vmul.f32 -1.0, %v1136_v23  ;;  %v1135_v37 = vsub.f32 %v3589_v50, %v1103_v4  ;;  %v2395_v33 = vpop.f32.mrb[14].mxu1  ;;  %v313_v1 = vpop.f32.mrb[15].mxu0  ;;  %1306 = vst [vmem:[#allocation2 + $0xa8] sm:$0xff] %v2526_v28 }
 0x136   :  { %2543 = vpow2.f32 %v1237_v60  ;;  %1184 = vst [vmem:[#allocation6 + $0xd8] sm:$0xff] %v1152_v27  ;;  %v1216_v17 = vmul.f32 -1.0, %v1152_v27  ;;  %v1151_v36 = vsub.f32 %v3645_v62, %v1119_v6  ;;  %v1106_v38 = vmul.f32 2.0, %v2336_v48  ;;  %v554_v47 = vpop.f32.mrb[15].mxu1  ;;  %v2528_v34 = vpop.eup %2527 }
 0x137   :  { %2545 = vpow2.f32 %v1269_v10  ;;  %v1243_v52 = vmul.f32 1.442695, %v1200_v44  ;;  %1167 = vst [vmem:[#allocation6 + $0x50] sm:$0xff] %v1135_v37  ;;  %v1199_v12 = vmul.f32 -1.0, %v1135_v37  ;;  %v1122_v24 = vmul.f32 2.0, %v2392_v16  ;;  %v2530_v59 = vpop.eup %2529  ;;  %1289 = vst [vmem:[#allocation2 + $0x20] sm:$0xff] %v2528_v34 }
 0x138   :  { %v1275_v61 = vmul.f32 1.442695, %v1216_v17  ;;  %1183 = vst [vmem:[#allocation6 + $0xd0] sm:$0xff] %v1151_v36  ;;  %v1215_v50 = vmul.f32 -1.0, %v1151_v36  ;;  %v1138_v20 = vsub.f32 %v3606_v19, %v1106_v38  ;;  %v1105_v26 = vmul.f32 2.0, %v303_v43  ;;  %v2532_v39 = vpop.eup %2531  ;;  %1305 = vst [vmem:[#allocation2 + $0xa0] sm:$0xff] %v2530_v59 }
 0x139   :  { %2547 = vpow2.f32 %v1243_v52  ;;  %v1241_v62 = vmul.f32 1.442695, %v1199_v12  ;;  %v1154_v58 = vsub.f32 %v3647_v51, %v1122_v24  ;;  %v1121_v13 = vmul.f32 2.0, %v544_v45  ;;  %v2534_v32 = vpop.eup %2533  ;;  %1292 = vst [vmem:[#allocation2 + $0x38] sm:$0xff] %v2532_v39 }
 0x13a   :  { %2549 = vpow2.f32 %v1275_v61  ;;  %v1273_v53 = vmul.f32 1.442695, %v1215_v50  ;;  %1170 = vst [vmem:[#allocation6 + $0x68] sm:$0xff] %v1138_v20  ;;  %v1202_v41 = vmul.f32 -1.0, %v1138_v20  ;;  %v1137_v18 = vsub.f32 %v3609_v9, %v1105_v26  ;;  %v2536_v46 = vpop.eup %2535  ;;  %1308 = vst [vmem:[#allocation2 + $0xb8] sm:$0xff] %v2534_v32 }
 0x13b   :  { %2551 = vpow2.f32 %v1241_v62  ;;  %1186 = vst [vmem:[#allocation6 + $0xe8] sm:$0xff] %v1154_v58  ;;  %v1218_v19 = vmul.f32 -1.0, %v1154_v58  ;;  %v1153_v54 = vsub.f32 %v3649_v11, %v1121_v13  ;;  %v1108_v29 = vmul.f32 2.0, %v2339_v40  ;;  %1291 = vst [vmem:[#allocation2 + $0x30] sm:$0xff] %v2536_v46 }
 0x13c   :  { %v2538_v5 = vpop.eup %2537  ;;  %2553 = vpow2.f32 %v1273_v53  ;;  %v1247_v51 = vmul.f32 1.442695, %v1202_v41  ;;  %1169 = vst [vmem:[#allocation6 + $0x60] sm:$0xff] %v1137_v18  ;;  %v1201_v63 = vmul.f32 -1.0, %v1137_v18  ;;  %v1124_v3 = vmul.f32 2.0, %v2395_v33 }
 0x13d   :  { %1307 = vst [vmem:[#allocation2 + $0xb0] sm:$0xff] %v2538_v5  ;;  %v1279_v21 = vmul.f32 1.442695, %v1218_v19  ;;  %1185 = vst [vmem:[#allocation6 + $0xe0] sm:$0xff] %v1153_v54  ;;  %v1217_v0 = vmul.f32 -1.0, %v1153_v54  ;;  %v1140_v9 = vsub.f32 %v3618_v35, %v1108_v29  ;;  %v1107_v48 = vmul.f32 2.0, %v313_v1  ;;  %v2540_v56 = vpop.eup %2539 }
 0x13e   :  { %2555 = vpow2.f32 %v1247_v51  ;;  %v1245_v30 = vmul.f32 1.442695, %v1201_v63  ;;  %v1156_v11 = vsub.f32 %v3651_v14, %v1124_v3  ;;  %v1123_v7 = vmul.f32 2.0, %v554_v47  ;;  %1294 = vst [vmem:[#allocation2 + $0x48] sm:$0xff] %v2540_v56 }
 0x13f   :  { %v2542_v2 = vpop.eup %2541  ;;  %2557 = vpow2.f32 %v1279_v21  ;;  %v1277_v16 = vmul.f32 1.442695, %v1217_v0  ;;  %1172 = vst [vmem:[#allocation6 + $0x78] sm:$0xff] %v1140_v9  ;;  %v1204_v43 = vmul.f32 -1.0, %v1140_v9  ;;  %v1139_v22 = vsub.f32 %v3621_v31, %v1107_v48 }
 0x140   :  { %v2544_v8 = vpop.eup %2543  ;;  %1310 = vst [vmem:[#allocation2 + $0xc8] sm:$0xff] %v2542_v2  ;;  %2559 = vpow2.f32 %v1245_v30  ;;  %1188 = vst [vmem:[#allocation6 + $0xf8] sm:$0xff] %v1156_v11  ;;  %v1220_v35 = vmul.f32 -1.0, %v1156_v11  ;;  %v1155_v42 = vsub.f32 %v3653_v55, %v1123_v7 }
 0x141   :  { %v2546_v57 = vpop.eup %2545  ;;  %1293 = vst [vmem:[#allocation2 + $0x40] sm:$0xff] %v2544_v8  ;;  %2561 = vpow2.f32 %v1277_v16  ;;  %v1251_v14 = vmul.f32 1.442695, %v1204_v43  ;;  %1171 = vst [vmem:[#allocation6 + $0x70] sm:$0xff] %v1139_v22  ;;  %v1203_v45 = vmul.f32 -1.0, %v1139_v22 }
 0x142   :  { %1309 = vst [vmem:[#allocation2 + $0xc0] sm:$0xff] %v2546_v57  ;;  %v1283_v25 = vmul.f32 1.442695, %v1220_v35  ;;  %1187 = vst [vmem:[#allocation6 + $0xf0] sm:$0xff] %v1155_v42  ;;  %v1219_v49 = vmul.f32 -1.0, %v1155_v42 }
 0x143   :  { %v2548_v23 = vpop.eup %2547  ;;  %2563 = vpow2.f32 %v1251_v14  ;;  %v1249_v31 = vmul.f32 1.442695, %v1203_v45 }
 0x144   :  { %v2550_v4 = vpop.eup %2549  ;;  %1296 = vst [vmem:[#allocation2 + $0x58] sm:$0xff] %v2548_v23  ;;  %2565 = vpow2.f32 %v1283_v25  ;;  %v1281_v15 = vmul.f32 1.442695, %v1219_v49 }
 0x145   :  { %v2552_v60 = vpop.eup %2551  ;;  %1312 = vst [vmem:[#allocation2 + $0xd8] sm:$0xff] %v2550_v4  ;;  %2567 = vpow2.f32 %v1249_v31 }
 0x146   :  { %v2554_v55 = vpop.eup %2553  ;;  %1295 = vst [vmem:[#allocation2 + $0x50] sm:$0xff] %v2552_v60  ;;  %2569 = vpow2.f32 %v1281_v15 }
 0x147   :  { %1311 = vst [vmem:[#allocation2 + $0xd0] sm:$0xff] %v2554_v55 }
 0x148   :  { %v2556_v27 = vpop.eup %2555 }
 0x149   :  { %v2558_v6 = vpop.eup %2557  ;;  %1298 = vst [vmem:[#allocation2 + $0x68] sm:$0xff] %v2556_v27 }
 0x14a   :  { %v2560_v40 = vpop.eup %2559  ;;  %1314 = vst [vmem:[#allocation2 + $0xe8] sm:$0xff] %v2558_v6 }
 0x14b   :  { %v2562_v28 = vpop.eup %2561  ;;  %1297 = vst [vmem:[#allocation2 + $0x60] sm:$0xff] %v2560_v40 }
 0x14c   :  { %1313 = vst [vmem:[#allocation2 + $0xe0] sm:$0xff] %v2562_v28 }
 0x14d   :  { %v2564_v10 = vpop.eup %2563 }
 0x14e   :  { %v2566_v44 = vpop.eup %2565  ;;  %1300 = vst [vmem:[#allocation2 + $0x78] sm:$0xff] %v2564_v10 }
 0x14f   :  { %v2568_v37 = vpop.eup %2567  ;;  %1316 = vst [vmem:[#allocation2 + $0xf8] sm:$0xff] %v2566_v44 }
 0x150   :  { %v2570_v33 = vpop.eup %2569  ;;  %1299 = vst [vmem:[#allocation2 + $0x70] sm:$0xff] %v2568_v37 }
 0x151   :  { %1315 = vst [vmem:[#allocation2 + $0xf0] sm:$0xff] %v2570_v33 }
 0x152 LB: > { %s1325_s12 = sld [smem:[#allocation3]]  ;;  %s2761_s11 = sphi %s3679_s11, %s1324_s11  }
 0x158   : > { %p2219_p0 = scmp.ne.s32.totalorder %s1325_s12, 0 }
 0x159   : > { %v3684_v1 = vld [vmem:[#allocation2] sm:$0xff] (!%p2219_p0)  ;;  %v3686_v17 = vld [vmem:[#allocation2 + $0x10] sm:$0xff] (!%p2219_p0)  ;;  %v3690_v36 = vld [vmem:[#allocation2 + $0x8] sm:$0xff] (!%p2219_p0)  ;;  %vm1800_vm1 = vcmask (!%p2219_p0), 7168  }
 0x15a   : > { %1329 = sbr.rel (%p2219_p0) target bundleno = 810 (0x32a), region = 20  ;;  %1362 = vadd.xlane.f32.xlu0 (!%p2219_p0), %v3684_v1  ;;  %1366 = vadd.xlane.f32.xlu1 (!%p2219_p0), %v3686_v17  ;;  %v3692_v38 = vld [vmem:[#allocation2 + $0x18] sm:$0xff] (!%p2219_p0)  ;;  %v3696_v47 = vld [vmem:[#allocation2 + $0x20] sm:$0xff] (!%p2219_p0)  ;;  %v3698_v34 = vld [vmem:[#allocation2 + $0x28] sm:$0xff] (!%p2219_p0) }
 0x15b   : > { %v3702_v52 = vld [vmem:[#allocation2 + $0x30] sm:$0xff] (!%p2219_p0)  ;;  %v3704_v12 = vld [vmem:[#allocation2 + $0x38] sm:$0xff] (!%p2219_p0)  ;;  %v3708_v24 = vld [vmem:[#allocation2 + $0x40] sm:$0xff] (!%p2219_p0) }
 0x15c   : > { %v3710_v59 = vld [vmem:[#allocation2 + $0x48] sm:$0xff] (!%p2219_p0)  ;;  %v3714_v61 = vld [vmem:[#allocation2 + $0x50] sm:$0xff] (!%p2219_p0)  ;;  %v3716_v50 = vld [vmem:[#allocation2 + $0x58] sm:$0xff] (!%p2219_p0) }
 0x15d   : > { %v3720_v20 = vld [vmem:[#allocation2 + $0x60] sm:$0xff] (!%p2219_p0)  ;;  %v3722_v26 = vld [vmem:[#allocation2 + $0x68] sm:$0xff] (!%p2219_p0)  ;;  %v3726_v39 = vld [vmem:[#allocation2 + $0x70] sm:$0xff] (!%p2219_p0) }
 0x15e   : > { %1364 = vadd.xlane.f32.xlu0 (!%p2219_p0), %v3690_v36  ;;  %1368 = vadd.xlane.f32.xlu1 (!%p2219_p0), %v3692_v38  ;;  %v3728_v62 = vld [vmem:[#allocation2 + $0x78] sm:$0xff] (!%p2219_p0)  ;;  %v3732_v58 = vld [vmem:[#allocation2 + $0x80] sm:$0xff] (!%p2219_p0)  ;;  %v3734_v13 = vld [vmem:[#allocation2 + $0x88] sm:$0xff] (!%p2219_p0) }
 0x15f   : > { %v3738_v32 = vld [vmem:[#allocation2 + $0x90] sm:$0xff] (!%p2219_p0)  ;;  %v3740_v53 = vld [vmem:[#allocation2 + $0x98] sm:$0xff] (!%p2219_p0)  ;;  %v3744_v41 = vld [vmem:[#allocation2 + $0xa0] sm:$0xff] (!%p2219_p0) }
 0x160   : > { %v3746_v18 = vld [vmem:[#allocation2 + $0xa8] sm:$0xff] (!%p2219_p0)  ;;  %v3750_v46 = vld [vmem:[#allocation2 + $0xb0] sm:$0xff] (!%p2219_p0)  ;;  %v3752_v19 = vld [vmem:[#allocation2 + $0xb8] sm:$0xff] (!%p2219_p0) }
 0x161   : > { %v3756_v54 = vld [vmem:[#allocation2 + $0xc0] sm:$0xff]  ;;  %v3758_v29 = vld [vmem:[#allocation2 + $0xc8] sm:$0xff]  ;;  %v3762_v5 = vld [vmem:[#allocation2 + $0xd0] sm:$0xff] }
 0x162   : > { %1370 = vadd.xlane.f32.xlu0 %v3696_v47  ;;  %1372 = vadd.xlane.f32.xlu1 %v3698_v34  ;;  %v3764_v51 = vld [vmem:[#allocation2 + $0xd8] sm:$0xff]  ;;  %v3768_v63 = vld [vmem:[#allocation2 + $0xe0] sm:$0xff]  ;;  %v3770_v3 = vld [vmem:[#allocation2 + $0xe8] sm:$0xff] }
 0x163   : > { %v3774_v21 = vld [vmem:[#allocation2 + $0xf0] sm:$0xff]  ;;  %v3776_v0 = vld [vmem:[#allocation2 + $0xf8] sm:$0xff] }
 0x166   : > { %1374 = vadd.xlane.f32.xlu0 %v3702_v52  ;;  %1376 = vadd.xlane.f32.xlu1 %v3704_v12 }
 0x16a   : > { %1378 = vadd.xlane.f32.xlu0 %v3708_v24  ;;  %1380 = vadd.xlane.f32.xlu1 %v3710_v59 }
 0x16e   : > { %1382 = vadd.xlane.f32.xlu0 %v3714_v61  ;;  %1384 = vadd.xlane.f32.xlu1 %v3716_v50 }
 0x172   : > { %1386 = vadd.xlane.f32.xlu0 %v3720_v20  ;;  %1388 = vadd.xlane.f32.xlu1 %v3722_v26 }
 0x176   : > { %1390 = vadd.xlane.f32.xlu0 %v3726_v39  ;;  %1392 = vadd.xlane.f32.xlu1 %v3728_v62 }
 0x17a   : > { %1394 = vadd.xlane.f32.xlu0 %v3732_v58  ;;  %1396 = vadd.xlane.f32.xlu1 %v3734_v13 }
 0x17e   : > { %1398 = vadd.xlane.f32.xlu0 %v3738_v32  ;;  %1400 = vadd.xlane.f32.xlu1 %v3740_v53 }
 0x182   : > { %1402 = vadd.xlane.f32.xlu0 %v3744_v41  ;;  %1404 = vadd.xlane.f32.xlu1 %v3746_v18 }
 0x186   : > { %1406 = vadd.xlane.f32.xlu0 %v3750_v46  ;;  %1408 = vadd.xlane.f32.xlu1 %v3752_v19 }
 0x18a   : > { %1410 = vadd.xlane.f32.xlu0 %v3756_v54  ;;  %1412 = vadd.xlane.f32.xlu1 %v3758_v29 }
 0x18e   : > { %1414 = vadd.xlane.f32.xlu0 %v3762_v5  ;;  %1416 = vadd.xlane.f32.xlu1 %v3764_v51 }
 0x192   : > { %1418 = vadd.xlane.f32.xlu0 %v3768_v63  ;;  %1420 = vadd.xlane.f32.xlu1 %v3770_v3 }
 0x196   : > { %1422 = vadd.xlane.f32.xlu0 %v3774_v21  ;;  %1424 = vadd.xlane.f32.xlu1 %v3776_v0 }
 0x1e7   : > { %v1363_v9 = vpop.xlane.xlu0 %1362  ;;  %v1367_v48 = vpop.xlane.xlu1 %1366 }
 0x1e8   : > { %v1426_v56 = vadd.f32 1e-06, %v1363_v9  ;;  %v1428_v30 = vadd.f32 1e-06, %v1367_v48 }
 0x1ea   : > { %2571 = vlog2.f32 %v1426_v56 }
 0x1eb   : > { %2573 = vlog2.f32 %v1428_v30  ;;  %v1365_v11 = vpop.xlane.xlu0 %1364  ;;  %v1369_v7 = vpop.xlane.xlu1 %1368 }
 0x1ec   : > { %v1427_v2 = vadd.f32 1e-06, %v1365_v11  ;;  %v1429_v16 = vadd.f32 1e-06, %v1369_v7 }
 0x1ee   : > { %2575 = vlog2.f32 %v1427_v2 }
 0x1ef   : > { %2577 = vlog2.f32 %v1429_v16  ;;  %v1371_v43 = vpop.xlane.xlu0 %1370  ;;  %v1373_v22 = vpop.xlane.xlu1 %1372 }
 0x1f0   : > { %v1430_v8 = vadd.f32 1e-06, %v1371_v43  ;;  %v1431_v35 = vadd.f32 1e-06, %v1373_v22 }
 0x1f2   : > { %2579 = vlog2.f32 %v1430_v8 }
 0x1f3   : > { %2581 = vlog2.f32 %v1431_v35  ;;  %v1375_v42 = vpop.xlane.xlu0 %1374  ;;  %v1377_v57 = vpop.xlane.xlu1 %1376 }
 0x1f4   : > { %v2572_v14 = vpop.eup %2571  ;;  %v1432_v45 = vadd.f32 1e-06, %v1375_v42  ;;  %v1433_v25 = vadd.f32 1e-06, %v1377_v57 }
 0x1f5   : > { %v2574_v49 = vpop.eup %2573  ;;  %v1459_v23 = vmul.f32 0.6931472, %v2572_v14 }
 0x1f6   : > { %v1463_v31 = vmul.f32 0.6931472, %v2574_v49  ;;  %2583 = vlog2.f32 %v1432_v45 }
 0x1f7   : > { %v1522_v4 = vsub.f32 -4.852029, %v1459_v23  ;;  %2585 = vlog2.f32 %v1433_v25  ;;  %v1379_v15 = vpop.xlane.xlu0 %1378  ;;  %v1381_v60 = vpop.xlane.xlu1 %1380 }
 0x1f8   : > { %v2576_v55 = vpop.eup %2575  ;;  %v1524_v27 = vsub.f32 -4.852029, %v1463_v31  ;;  %v1434_v6 = vadd.f32 1e-06, %v1379_v15  ;;  %v1435_v40 = vadd.f32 1e-06, %v1381_v60 }
 0x1f9   : > { %v2578_v28 = vpop.eup %2577  ;;  %v1554_v10 = vmul.f32 1.442695, %v1522_v4  ;;  %v1768_v44 = vand.u32 2147483647, %v1522_v4  ;;  %v1461_v37 = vmul.f32 0.6931472, %v2576_v55 }
 0x1fa   : > { %v1558_v33 = vmul.f32 1.442695, %v1524_v27  ;;  %v1770_v9 = vand.u32 2147483647, %v1524_v27  ;;  %v1465_v48 = vmul.f32 0.6931472, %v2578_v28  ;;  %2587 = vlog2.f32 %v1434_v6 }
 0x1fb   : > { %2589 = vpow2.f32 %v1554_v10  ;;  %v1801_v56 = vsel %vm1800_vm1, %v1768_v44, 0.0  ;;  %v1523_v30 = vsub.f32 -4.852029, %v1461_v37  ;;  %v1383_v11 = vpop.xlane.xlu0 %1382  ;;  %v1385_v7 = vpop.xlane.xlu1 %1384 }
 0x1fc   : > { %v2580_v2 = vpop.eup %2579  ;;  %2591 = vpow2.f32 %v1558_v33  ;;  %v1804_v16 = vsel %vm1800_vm1, %v1770_v9, 0.0  ;;  %v1525_v43 = vsub.f32 -4.852029, %v1465_v48  ;;  %v1436_v22 = vadd.f32 1e-06, %v1383_v11 }
 0x1fd   : > { %v2582_v8 = vpop.eup %2581  ;;  %v1556_v35 = vmul.f32 1.442695, %v1523_v30  ;;  %v1769_v42 = vand.u32 2147483647, %v1523_v30  ;;  %v1467_v57 = vmul.f32 0.6931472, %v2580_v2  ;;  %2593 = vlog2.f32 %v1435_v40 }
 0x1fe   : > { %v1560_v14 = vmul.f32 1.442695, %v1525_v43  ;;  %v1771_v45 = vand.u32 2147483647, %v1525_v43  ;;  %v1469_v25 = vmul.f32 0.6931472, %v2582_v8  ;;  %2595 = vlog2.f32 %v1436_v22 }
 0x1ff   : > { %2597 = vpow2.f32 %v1556_v35  ;;  %v1802_v49 = vsel %vm1800_vm1, %v1769_v42, 0.0  ;;  %v1526_v23 = vsub.f32 -4.852029, %v1467_v57  ;;  %v1437_v31 = vadd.f32 1e-06, %v1385_v7  ;;  %v1387_v4 = vpop.xlane.xlu0 %1386  ;;  %v1389_v15 = vpop.xlane.xlu1 %1388 }
 0x200   : > { %v2584_v60 = vpop.eup %2583  ;;  %v1803_v55 = vadd.f32 %v1802_v49, %v1801_v56  ;;  %2599 = vpow2.f32 %v1560_v14  ;;  %v1806_v27 = vsel %vm1800_vm1, %v1771_v45, 0.0  ;;  %v1527_v6 = vsub.f32 -4.852029, %v1469_v25 }
 0x201   : > { %v2586_v28 = vpop.eup %2585  ;;  %v1562_v10 = vmul.f32 1.442695, %v1526_v23  ;;  %v1772_v40 = vand.u32 2147483647, %v1526_v23  ;;  %v1471_v44 = vmul.f32 0.6931472, %v2584_v60  ;;  %2601 = vlog2.f32 %v1437_v31 }
 0x202   : > { %v1805_v37 = vadd.f32 %v1804_v16, %v1803_v55  ;;  %v1564_v33 = vmul.f32 1.442695, %v1527_v6  ;;  %v1773_v9 = vand.u32 2147483647, %v1527_v6  ;;  %v1473_v48 = vmul.f32 0.6931472, %v2586_v28 }
 0x203   : > { %2603 = vpow2.f32 %v1562_v10  ;;  %v1808_v30 = vsel %vm1800_vm1, %v1772_v40, 0.0  ;;  %v1528_v11 = vsub.f32 -4.852029, %v1471_v44  ;;  %v1438_v7 = vadd.f32 1e-06, %v1387_v4  ;;  %v3785_v2 = vpop.xlane.xlu0 %1390  ;;  %v3787_v56 = vpop.xlane.xlu1 %1392 }
 0x204   : > { %v2588_v43 = vpop.eup %2587  ;;  %v1807_v22 = vadd.f32 %v1806_v27, %v1805_v37  ;;  %2605 = vpow2.f32 %v1564_v33  ;;  %v1810_v8 = vsel %vm1800_vm1, %v1773_v9, 0.0  ;;  %v1529_v35 = vsub.f32 -4.852029, %v1473_v48 }
 0x205   : > { %v2590_v42 = vpop.eup %2589  ;;  %v1566_v16 = vmul.f32 1.442695, %v1528_v11  ;;  %v1774_v57 = vand.u32 2147483647, %v1528_v11  ;;  %v1475_v14 = vmul.f32 0.6931472, %v2588_v43  ;;  %2607 = vlog2.f32 %v1438_v7 }
 0x206   : > { %v2592_v45 = vpop.eup %2591  ;;  %v1809_v25 = vadd.f32 %v1808_v30, %v1807_v22  ;;  %v1568_v49 = vmul.f32 1.442695, %v1529_v35  ;;  %v1775_v23 = vand.u32 2147483647, %v1529_v35  ;;  %v3791_v4 = vmul.f32 %v2590_v42, %v3684_v1 }
 0x207   : > { %v2594_v31 = vpop.eup %2593  ;;  %2609 = vpow2.f32 %v1566_v16  ;;  %v1812_v60 = vsel %vm1800_vm1, %v1774_v57, 0.0  ;;  %v1530_v55 = vsub.f32 -4.852029, %v1475_v14  ;;  %v1395_v27 = vpop.xlane.xlu0 %1394  ;;  %v3798_v33 = vmul.f32 %v2592_v45, %v3686_v17 }
 0x208   : > { %v3794_v6 = vpop.xlane.xlu1 %1396  ;;  %v2596_v28 = vpop.eup %2595  ;;  %v1811_v10 = vadd.f32 %v1810_v8, %v1809_v25  ;;  %2611 = vpow2.f32 %v1568_v49  ;;  %v1814_v40 = vsel %vm1800_vm1, %v1775_v23, 0.0  ;;  %v1477_v44 = vmul.f32 0.6931472, %v2594_v31 }
 0x209   : > { %v2598_v37 = vpop.eup %2597  ;;  %v1570_v9 = vmul.f32 1.442695, %v1530_v55  ;;  %v1776_v1 = vand.u32 2147483647, %v1530_v55  ;;  %v1479_v48 = vmul.f32 0.6931472, %v2596_v28 }
 0x20a   : > { %v2600_v30 = vpop.eup %2599  ;;  %v3801_v11 = vmul.f32 %v2598_v37, %v3690_v36  ;;  %v1813_v7 = vadd.f32 %v1812_v60, %v1811_v10  ;;  %v1531_v43 = vsub.f32 -4.852029, %v1477_v44  ;;  %v1439_v22 = vadd.f32 1e-06, %v1389_v15 }
 0x20b   : > { %v2602_v35 = vpop.eup %2601  ;;  %v3804_v8 = vmul.f32 %v2600_v30, %v3692_v38  ;;  %2613 = vpow2.f32 %v1570_v9  ;;  %v1816_v42 = vsel %vm1800_vm1, %v1776_v1, 0.0  ;;  %v1532_v16 = vsub.f32 -4.852029, %v1479_v48  ;;  %v1399_v17 = vpop.xlane.xlu0 %1398 }
 0x20c   : > { %v1401_v57 = vpop.xlane.xlu1 %1400  ;;  %v1650_v14 = vadd.f32 %v3801_v11, %v3791_v4  ;;  %v1815_v45 = vadd.f32 %v1814_v40, %v1813_v7  ;;  %v1572_v25 = vmul.f32 1.442695, %v1531_v43  ;;  %v1777_v36 = vand.u32 2147483647, %v1531_v43 }
 0x20d   : > { %v2604_v49 = vpop.eup %2603  ;;  %v1574_v23 = vmul.f32 1.442695, %v1532_v16  ;;  %v1778_v31 = vand.u32 2147483647, %v1532_v16  ;;  %v1481_v15 = vmul.f32 0.6931472, %v2602_v35  ;;  %2615 = vlog2.f32 %v1439_v22 }
 0x20e   : > { %v2606_v60 = vpop.eup %2605  ;;  %v1651_v38 = vadd.f32 %v1650_v14, %v3798_v33  ;;  %v3811_v55 = vmul.f32 %v2604_v49, %v3696_v47  ;;  %v1817_v28 = vadd.f32 %v1816_v42, %v1815_v45  ;;  %2617 = vpow2.f32 %v1572_v25 }
 0x20f   : > { %v2608_v10 = vpop.eup %2607  ;;  %v3814_v44 = vmul.f32 %v2606_v60, %v3698_v34  ;;  %v1818_v40 = vsel %vm1800_vm1, %v1777_v36, 0.0  ;;  %2619 = vpow2.f32 %v1574_v23  ;;  %v1820_v37 = vsel %vm1800_vm1, %v1778_v31, 0.0  ;;  %v1403_v9 = vpop.xlane.xlu0 %1402 }
 0x210   : > { %v1405_v1 = vpop.xlane.xlu1 %1404  ;;  %v1652_v48 = vadd.f32 %v1651_v38, %v3804_v8  ;;  %v1819_v30 = vadd.f32 %v1818_v40, %v1817_v28  ;;  %v1533_v7 = vsub.f32 -4.852029, %v1481_v15  ;;  %v1483_v43 = vmul.f32 0.6931472, %v2608_v10 }
 0x211   : > { %v2610_v47 = vpop.eup %2609  ;;  %v1440_v22 = vadd.f32 1e-06, %v3785_v2  ;;  %v1441_v35 = vadd.f32 1e-06, %v3787_v56  ;;  %v1442_v42 = vadd.f32 1e-06, %v1395_v27 }
 0x212   : > { %v2612_v34 = vpop.eup %2611  ;;  %v1653_v16 = vadd.f32 %v1652_v48, %v3811_v55  ;;  %v3823_v14 = vmul.f32 %v2610_v47, %v3702_v52  ;;  %v1821_v45 = vadd.f32 %v1820_v37, %v1819_v30  ;;  %v1576_v25 = vmul.f32 1.442695, %v1533_v7 }
 0x213   : > { %v3826_v36 = vmul.f32 %v2612_v34, %v3704_v12  ;;  %v1779_v49 = vand.u32 2147483647, %v1533_v7  ;;  %v1534_v23 = vsub.f32 -4.852029, %v1483_v43  ;;  %2621 = vlog2.f32 %v1440_v22  ;;  %v1407_v31 = vpop.xlane.xlu0 %1406 }
 0x214   : > { %v1654_v2 = vadd.f32 %v1653_v16, %v3814_v44  ;;  %2623 = vpow2.f32 %v1576_v25  ;;  %v1443_v56 = vadd.f32 1e-06, %v3794_v6  ;;  %v1444_v27 = vadd.f32 1e-06, %v1399_v17  ;;  %v1409_v15 = vpop.xlane.xlu1 %1408 }
 0x215   : > { %v2614_v60 = vpop.eup %2613  ;;  %v1822_v52 = vsel %vm1800_vm1, %v1779_v49, 0.0  ;;  %v1578_v38 = vmul.f32 1.442695, %v1534_v23  ;;  %v1780_v28 = vand.u32 2147483647, %v1534_v23  ;;  %2625 = vlog2.f32 %v1441_v35 }
 0x216   : > { %v1655_v12 = vadd.f32 %v1654_v2, %v3823_v14  ;;  %v3833_v10 = vmul.f32 %v2614_v60, %v3708_v24  ;;  %2627 = vlog2.f32 %v1442_v42  ;;  %v1823_v37 = vadd.f32 %v1822_v52, %v1821_v45 }
 0x217   : > { %v2616_v40 = vpop.eup %2615  ;;  %2629 = vpow2.f32 %v1578_v38  ;;  %v1445_v48 = vadd.f32 1e-06, %v1401_v57  ;;  %v1446_v30 = vadd.f32 1e-06, %v1403_v9  ;;  %v1411_v6 = vpop.xlane.xlu0 %1410  ;;  %v1824_v43 = vsel %vm1800_vm1, %v1780_v28, 0.0 }
 0x218   : > { %v2618_v17 = vpop.eup %2617  ;;  %v1656_v7 = vadd.f32 %v1655_v12, %v3826_v36  ;;  %v1485_v47 = vmul.f32 0.6931472, %v2616_v40  ;;  %2631 = vlog2.f32 %v1443_v56  ;;  %v1447_v24 = vadd.f32 1e-06, %v1405_v1  ;;  %v1413_v16 = vpop.xlane.xlu1 %1412 }
 0x219   : > { %v2620_v22 = vpop.eup %2619  ;;  %v3838_v35 = vmul.f32 %v2618_v17, %v3710_v59  ;;  %2633 = vlog2.f32 %v1444_v27  ;;  %v1448_v42 = vadd.f32 1e-06, %v1407_v31  ;;  %v1449_v45 = vadd.f32 1e-06, %v1409_v15 }
 0x21a   : > { %v1657_v34 = vadd.f32 %v1656_v7, %v3833_v10  ;;  %v3842_v57 = vmul.f32 %v2620_v22, %v3714_v61  ;;  %v1535_v9 = vsub.f32 -4.852029, %v1485_v47  ;;  %2635 = vlog2.f32 %v1445_v48 }
 0x21b   : > { %2637 = vlog2.f32 %v1446_v30  ;;  %v1450_v25 = vadd.f32 1e-06, %v1411_v6  ;;  %v1415_v59 = vpop.xlane.xlu0 %1414  ;;  %v1825_v1 = vadd.f32 %v1824_v43, %v1823_v37  ;;  %v1451_v31 = vadd.f32 1e-06, %v1413_v16 }
 0x21c   : > { %v1658_v49 = vadd.f32 %v1657_v34, %v3838_v35  ;;  %v1580_v23 = vmul.f32 1.442695, %v1535_v9  ;;  %v1781_v2 = vand.u32 2147483647, %v1535_v9  ;;  %2639 = vlog2.f32 %v1447_v24 }
 0x21d   : > { %v2622_v56 = vpop.eup %2621  ;;  %2641 = vlog2.f32 %v1448_v42  ;;  %v1452_v28 = vadd.f32 1e-06, %v1415_v59 }
 0x21e   : > { %v2624_v27 = vpop.eup %2623  ;;  %v1659_v61 = vadd.f32 %v1658_v49, %v3842_v57  ;;  %2643 = vpow2.f32 %v1580_v23  ;;  %v1826_v60 = vsel %vm1800_vm1, %v1781_v2, 0.0  ;;  %v1487_v52 = vmul.f32 0.6931472, %v2622_v56 }
 0x21f   : > { %v2626_v38 = vpop.eup %2625  ;;  %v3848_v15 = vmul.f32 %v2624_v27, %v3716_v50  ;;  %2645 = vlog2.f32 %v1449_v45  ;;  %v1827_v6 = vadd.f32 %v1826_v60, %v1825_v1 }
 0x220   : > { %v2628_v12 = vpop.eup %2627  ;;  %v1536_v40 = vsub.f32 -4.852029, %v1487_v52  ;;  %v1489_v48 = vmul.f32 0.6931472, %v2626_v38  ;;  %2647 = vlog2.f32 %v1450_v25 }
 0x221   : > { %v2630_v37 = vpop.eup %2629  ;;  %v1660_v30 = vadd.f32 %v1659_v61, %v3848_v15  ;;  %v1491_v17 = vmul.f32 0.6931472, %v2628_v12  ;;  %2649 = vlog2.f32 %v1451_v31 }
 0x222   : > { %v2632_v7 = vpop.eup %2631  ;;  %v3852_v43 = vmul.f32 %v2630_v37, %v3720_v20  ;;  %v1582_v47 = vmul.f32 1.442695, %v1536_v40  ;;  %v1782_v22 = vand.u32 2147483647, %v1536_v40  ;;  %v1537_v50 = vsub.f32 -4.852029, %v1489_v48 }
 0x223   : > { %v2634_v24 = vpop.eup %2633  ;;  %v1538_v42 = vsub.f32 -4.852029, %v1491_v17  ;;  %v1493_v34 = vmul.f32 0.6931472, %v2632_v7  ;;  %2651 = vlog2.f32 %v1452_v28 }
 0x224   : > { %v2636_v9 = vpop.eup %2635  ;;  %v1661_v16 = vadd.f32 %v1660_v30, %v3852_v43  ;;  %2653 = vpow2.f32 %v1582_v47  ;;  %v1828_v45 = vsel %vm1800_vm1, %v1782_v22, 0.0  ;;  %v1584_v25 = vmul.f32 1.442695, %v1537_v50 }
 0x225   : > { %v2638_v49 = vpop.eup %2637  ;;  %v1829_v23 = vadd.f32 %v1828_v45, %v1827_v6  ;;  %v1783_v2 = vand.u32 2147483647, %v1537_v50  ;;  %v1586_v59 = vmul.f32 1.442695, %v1538_v42  ;;  %v1784_v20 = vand.u32 2147483647, %v1538_v42 }
 0x226   : > { %v2640_v56 = vpop.eup %2639  ;;  %2655 = vpow2.f32 %v1584_v25  ;;  %v1539_v1 = vsub.f32 -4.852029, %v1493_v34  ;;  %v1495_v31 = vmul.f32 0.6931472, %v2634_v24  ;;  %v1497_v27 = vmul.f32 0.6931472, %v2636_v9 }
 0x227   : > { %v2642_v61 = vpop.eup %2641  ;;  %v1830_v60 = vsel %vm1800_vm1, %v1783_v2, 0.0  ;;  %2657 = vpow2.f32 %v1586_v59  ;;  %v1832_v52 = vsel %vm1800_vm1, %v1784_v20, 0.0  ;;  %v1499_v38 = vmul.f32 0.6931472, %v2638_v49 }
 0x228   : > { %v2644_v28 = vpop.eup %2643  ;;  %v1831_v12 = vadd.f32 %v1830_v60, %v1829_v23  ;;  %v1588_v40 = vmul.f32 1.442695, %v1539_v1  ;;  %v1785_v48 = vand.u32 2147483647, %v1539_v1  ;;  %v1540_v37 = vsub.f32 -4.852029, %v1495_v31 }
 0x229   : > { %v2646_v30 = vpop.eup %2645  ;;  %v3859_v6 = vmul.f32 %v2644_v28, %v3722_v26  ;;  %v1541_v17 = vsub.f32 -4.852029, %v1497_v27  ;;  %v1542_v7 = vsub.f32 -4.852029, %v1499_v38  ;;  %v1501_v47 = vmul.f32 0.6931472, %v2640_v56 }
 0x22a   : > { %v2648_v22 = vpop.eup %2647  ;;  %v1833_v50 = vadd.f32 %v1832_v52, %v1831_v12  ;;  %2659 = vpow2.f32 %v1588_v40  ;;  %v1834_v24 = vsel %vm1800_vm1, %v1785_v48, 0.0  ;;  %v1590_v42 = vmul.f32 1.442695, %v1540_v37  ;;  %v1417_v40 = vpop.xlane.xlu1 %1416 }
 0x22b   : > { %v2650_v34 = vpop.eup %2649  ;;  %v1662_v9 = vadd.f32 %v1661_v16, %v3859_v6  ;;  %v1786_v45 = vand.u32 2147483647, %v1540_v37  ;;  %v1592_v25 = vmul.f32 1.442695, %v1541_v17  ;;  %v1787_v49 = vand.u32 2147483647, %v1541_v17 }
 0x22c   : > { %v1835_v23 = vadd.f32 %v1834_v24, %v1833_v50  ;;  %2661 = vpow2.f32 %v1590_v42  ;;  %v1594_v2 = vmul.f32 1.442695, %v1542_v7  ;;  %v1788_v26 = vand.u32 2147483647, %v1542_v7 }
 0x22d   : > { %v2652_v59 = vpop.eup %2651  ;;  %v1836_v20 = vsel %vm1800_vm1, %v1786_v45, 0.0  ;;  %2663 = vpow2.f32 %v1592_v25  ;;  %v1838_v56 = vsel %vm1800_vm1, %v1787_v49, 0.0  ;;  %v1543_v1 = vsub.f32 -4.852029, %v1501_v47 }
 0x22e   : > { %v2654_v31 = vpop.eup %2653  ;;  %v1837_v27 = vadd.f32 %v1836_v20, %v1835_v23  ;;  %2665 = vpow2.f32 %v1594_v2  ;;  %v1840_v60 = vsel %vm1800_vm1, %v1788_v26, 0.0  ;;  %v1503_v16 = vmul.f32 0.6931472, %v2642_v61  ;;  %v1419_v20 = vpop.xlane.xlu0 %1418 }
 0x22f   : > { %v3867_v52 = vmul.f32 %v2654_v31, %v3726_v39  ;;  %v1596_v38 = vmul.f32 1.442695, %v1543_v1  ;;  %v1789_v28 = vand.u32 2147483647, %v1543_v1  ;;  %v1505_v12 = vmul.f32 0.6931472, %v2646_v30 }
 0x230   : > { %v2656_v48 = vpop.eup %2655  ;;  %v1839_v37 = vadd.f32 %v1838_v56, %v1837_v27  ;;  %v1544_v17 = vsub.f32 -4.852029, %v1503_v16  ;;  %v1507_v7 = vmul.f32 0.6931472, %v2648_v22  ;;  %v1509_v25 = vmul.f32 0.6931472, %v2650_v34  ;;  %v1421_v27 = vpop.xlane.xlu1 %1420 }
 0x231   : > { %v2658_v50 = vpop.eup %2657  ;;  %v1663_v47 = vadd.f32 %v1662_v9, %v3867_v52  ;;  %v3871_v24 = vmul.f32 %v2656_v48, %v3728_v62  ;;  %2667 = vpow2.f32 %v1596_v38  ;;  %v1842_v61 = vsel %vm1800_vm1, %v1789_v28, 0.0 }
 0x232   : > { %v1841_v42 = vadd.f32 %v1840_v60, %v1839_v37  ;;  %v1598_v39 = vmul.f32 1.442695, %v1544_v17  ;;  %v1790_v45 = vand.u32 2147483647, %v1544_v17  ;;  %v3876_v49 = vmul.f32 %v2658_v50, %v3732_v58 }
 0x233   : > { %v1664_v30 = vadd.f32 %v1663_v47, %v3871_v24  ;;  %v1545_v23 = vsub.f32 -4.852029, %v1505_v12  ;;  %v1546_v22 = vsub.f32 -4.852029, %v1507_v7  ;;  %v1453_v9 = vadd.f32 1e-06, %v1417_v40 }
 0x234   : > { %v2660_v2 = vpop.eup %2659  ;;  %v1843_v26 = vadd.f32 %v1842_v61, %v1841_v42  ;;  %2669 = vpow2.f32 %v1598_v39  ;;  %v1844_v62 = vsel %vm1800_vm1, %v1790_v45, 0.0  ;;  %v1547_v58 = vsub.f32 -4.852029, %v1509_v25  ;;  %v1423_v45 = vpop.xlane.xlu0 %1422 }
 0x235   : > { %v1665_v56 = vrot.slane %v1664_v30, 4  ;;  %v3880_v1 = vmul.f32 %v2660_v2, %v3734_v13  ;;  %v1600_v31 = vmul.f32 1.442695, %v1545_v23  ;;  %v1791_v34 = vand.u32 2147483647, %v1545_v23  ;;  %v1425_v23 = vpop.xlane.xlu1 %1424 }
 0x236   : > { %v2662_v60 = vpop.eup %2661  ;;  %v1602_v16 = vmul.f32 1.442695, %v1546_v22  ;;  %v1511_v38 = vmul.f32 0.6931472, %v2652_v59  ;;  %v1845_v17 = vadd.f32 %v1844_v62, %v1843_v26  ;;  %v1454_v7 = vadd.f32 1e-06, %v1419_v20 }
 0x237   : > { %v2664_v28 = vpop.eup %2663  ;;  %v1666_v12 = vadd.f32 %v1665_v56, %v1664_v30  ;;  %v1671_v48 = vadd.f32 %v3880_v1, %v3876_v49  ;;  %v3885_v37 = vmul.f32 %v2662_v60, %v3738_v32  ;;  %2671 = vpow2.f32 %v1600_v31 }
 0x238   : > { %v2666_v40 = vpop.eup %2665  ;;  %v3888_v13 = vmul.f32 %v2664_v28, %v3740_v53  ;;  %v1846_v61 = vsel %vm1800_vm1, %v1791_v34, 0.0  ;;  %2673 = vpow2.f32 %v1602_v16  ;;  %v1792_v42 = vand.u32 2147483647, %v1546_v22 }
 0x239   : > { %v1667_v50 = vrot.slane %v1666_v12, 2  ;;  %v1672_v47 = vadd.f32 %v1671_v48, %v3885_v37  ;;  %v3892_v59 = vmul.f32 %v2666_v40, %v3744_v41  ;;  %v1604_v39 = vmul.f32 1.442695, %v1547_v58 }
 0x23a   : > { %v1548_v32 = vsub.f32 -4.852029, %v1511_v38  ;;  %2675 = vlog2.f32 %v1453_v9  ;;  %v1847_v26 = vadd.f32 %v1846_v61, %v1845_v17  ;;  %v1455_v41 = vadd.f32 1e-06, %v1421_v27 }
 0x23b   : > { %v2668_v25 = vpop.eup %2667  ;;  %v1668_v30 = vadd.f32 %v1667_v50, %v1666_v12  ;;  %v1673_v53 = vadd.f32 %v1672_v47, %v3888_v13  ;;  %2677 = vlog2.f32 %v1454_v7  ;;  %v1456_v22 = vadd.f32 1e-06, %v1423_v45 }
 0x23c   : > { %v3897_v2 = vmul.f32 %v2668_v25, %v3746_v18  ;;  %v1606_v62 = vmul.f32 1.442695, %v1548_v32  ;;  %v1848_v34 = vsel %vm1800_vm1, %v1792_v42, 0.0  ;;  %2679 = vpow2.f32 %v1604_v39 }
 0x23d   : > { %v1669_v20 = vrot.slane %v1668_v30, 1  ;;  %v1674_v56 = vadd.f32 %v1673_v53, %v3892_v59  ;;  %v1793_v60 = vand.u32 2147483647, %v1547_v58  ;;  %v1457_v16 = vadd.f32 1e-06, %v1425_v23 }
 0x23e   : > { %v2670_v31 = vpop.eup %2669  ;;  %2681 = vpow2.f32 %v1606_v62  ;;  %v1849_v12 = vadd.f32 %v1848_v34, %v1847_v26  ;;  %v1794_v40 = vand.u32 2147483647, %v1548_v32 }
 0x23f   : > { %v1670_v38 = vadd.f32 %v1669_v20, %v1668_v30  ;;  %v1675_v9 = vadd.f32 %v1674_v56, %v3897_v2  ;;  %v3903_v18 = vmul.f32 %v2670_v31, %v3750_v46  ;;  %2683 = vlog2.f32 %v1455_v41 }
 0x240   : > { %2685 = vlog2.f32 %v1456_v22  ;;  %v1850_v48 = vsel %vm1800_vm1, %v1793_v60, 0.0  ;;  %v1852_v47 = vsel %vm1800_vm1, %v1794_v40, 0.0 }
 0x241   : > { %v2672_v27 = vpop.eup %2671  ;;  %v1692_v28 = vadd.f32 1e-06, %v1670_v38  ;;  %2687 = vlog2.f32 %v1457_v16  ;;  %v1676_v58 = vadd.f32 %v1675_v9, %v3903_v18  ;;  %v1851_v46 = vadd.f32 %v1850_v48, %v1849_v12 }
 0x242   : > { %v3908_v17 = vmul.f32 %v2672_v27, %v3752_v19  ;;  %v2674_v7 = vpop.eup %2673 }
 0x243   : > { %2689 = vlog2.f32 %v1692_v28  ;;  %v3913_v45 = vmul.f32 %v2674_v7, %v3756_v54  ;;  %v1853_v23 = vadd.f32 %v1852_v47, %v1851_v46 }
 0x244   : > { %v2676_v50 = vpop.eup %2675  ;;  %v1677_v39 = vadd.f32 %v1676_v58, %v3908_v17 }
 0x245   : > { %v1513_v61 = vmul.f32 0.6931472, %v2676_v50  ;;  %v2678_v42 = vpop.eup %2677 }
 0x246   : > { %v2680_v32 = vpop.eup %2679  ;;  %v1515_v30 = vmul.f32 0.6931472, %v2678_v42  ;;  %v1678_v56 = vadd.f32 %v1677_v39, %v3913_v45 }
 0x247   : > { %v1549_v25 = vsub.f32 -4.852029, %v1513_v61  ;;  %v3917_v22 = vmul.f32 %v2680_v32, %v3758_v29 }
 0x248   : > { %v2682_v53 = vpop.eup %2681  ;;  %v1550_v41 = vsub.f32 -4.852029, %v1515_v30 }
 0x249   : > { %v2684_v26 = vpop.eup %2683  ;;  %v1608_v19 = vmul.f32 1.442695, %v1549_v25  ;;  %v1795_v62 = vand.u32 2147483647, %v1549_v25  ;;  %v1679_v47 = vadd.f32 %v1678_v56, %v3917_v22  ;;  %v3923_v61 = vmul.f32 %v2682_v53, %v3762_v5 }
 0x24a   : > { %v2686_v20 = vpop.eup %2685  ;;  %v1517_v31 = vmul.f32 0.6931472, %v2684_v26  ;;  %v1610_v60 = vmul.f32 1.442695, %v1550_v41  ;;  %v1796_v16 = vand.u32 2147483647, %v1550_v41 }
 0x24b   : > { %v2688_v34 = vpop.eup %2687  ;;  %2691 = vpow2.f32 %v1608_v19  ;;  %v1854_v54 = vsel %vm1800_vm1, %v1795_v62, 0.0  ;;  %v1519_v28 = vmul.f32 0.6931472, %v2686_v20  ;;  %v1680_v5 = vadd.f32 %v1679_v47, %v3923_v61 }
 0x24c   : > { %v1855_v9 = vadd.f32 %v1854_v54, %v1853_v23  ;;  %v1551_v27 = vsub.f32 -4.852029, %v1517_v31  ;;  %v1521_v12 = vmul.f32 0.6931472, %v2688_v34  ;;  %2693 = vpow2.f32 %v1610_v60 }
 0x24d   : > { %v2690_v38 = vpop.eup %2689  ;;  %v1856_v40 = vsel %vm1800_vm1, %v1796_v16, 0.0  ;;  %v1552_v29 = vsub.f32 -4.852029, %v1519_v28 }
 0x24e   : > { %v1695_v48 = vmul.f32 0.6931472, %v2690_v38  ;;  %v1612_v58 = vmul.f32 1.442695, %v1551_v27  ;;  %v1797_v7 = vand.u32 2147483647, %v1551_v27  ;;  %v1857_v50 = vadd.f32 %v1856_v40, %v1855_v9 }
 0x24f   : > { %v1553_v42 = vsub.f32 -4.852029, %v1521_v12  ;;  %v1614_v39 = vmul.f32 1.442695, %v1552_v29  ;;  %v1798_v32 = vand.u32 2147483647, %v1552_v29 }
 0x250   : > { %v1698_v46 = vsub.f32 -4.852029, %v1695_v48  ;;  %2695 = vpow2.f32 %v1612_v58  ;;  %v1858_v25 = vsel %vm1800_vm1, %v1797_v7, 0.0 }
 0x251   : > { %v1616_v23 = vmul.f32 1.442695, %v1553_v42  ;;  %v1799_v26 = vand.u32 2147483647, %v1553_v42  ;;  %v1859_v19 = vadd.f32 %v1858_v25, %v1857_v50  ;;  %2697 = vpow2.f32 %v1614_v39 }
 0x252   : > { %v1700_v30 = vmul.f32 1.442695, %v1698_v46  ;;  %v1860_v62 = vsel %vm1800_vm1, %v1798_v32, 0.0 }
 0x253   : > { %v1861_v41 = vadd.f32 %v1860_v62, %v1859_v19  ;;  %v1862_v20 = vsel %vm1800_vm1, %v1799_v26, 0.0 }
 0x254   : > { %2699 = vpow2.f32 %v1700_v30 }
 0x255   : > { %v2692_v53 = vpop.eup %2691  ;;  %2701 = vpow2.f32 %v1616_v23  ;;  %v1863_v56 = vadd.f32 %v1862_v20, %v1861_v41 }
 0x256   : > { %v3930_v31 = vmul.f32 %v2692_v53, %v3764_v51  ;;  %v2694_v34 = vpop.eup %2693 }
 0x257   : > { %1864 = vadd.xlane.f32.xlu0 %v1863_v56  ;;  %v3934_v60 = vmul.f32 %v2694_v34, %v3768_v63 }
 0x258   : > { %v1681_v54 = vadd.f32 %v1680_v5, %v3930_v31 }
 0x25a   : > { %v2696_v16 = vpop.eup %2695  ;;  %v1682_v38 = vadd.f32 %v1681_v54, %v3934_v60 }
 0x25b   : > { %v3938_v9 = vmul.f32 %v2696_v16, %v3770_v3  ;;  %v2698_v27 = vpop.eup %2697 }
 0x25c   : > { %v3942_v51 = vmul.f32 %v2698_v27, %v3774_v21 }
 0x25d   : > { %v1683_v12 = vadd.f32 %v1682_v38, %v3938_v9 }
 0x25e   : > { %v2700_v28 = vpop.eup %2699 }
 0x25f   : > { %v1704_v48 = vmul.f32 %v2700_v28, %v3791_v4  ;;  %v1705_v40 = vmul.f32 %v2700_v28, %v3801_v11  ;;  %v1706_v63 = vmul.f32 %v2700_v28, %v3798_v33  ;;  %v1707_v58 = vmul.f32 %v2700_v28, %v3804_v8  ;;  %v2702_v7 = vpop.eup %2701 }
 0x260   : > { %v1708_v29 = vmul.f32 %v2700_v28, %v3811_v55  ;;  %v1709_v3 = vmul.f32 %v2700_v28, %v3814_v44  ;;  %v1710_v50 = vmul.f32 %v2700_v28, %v3823_v14  ;;  %v1711_v46 = vmul.f32 %v2700_v28, %v3826_v36 }
 0x261   : > { %v1712_v21 = vmul.f32 %v2700_v28, %v3833_v10  ;;  %v1713_v47 = vmul.f32 %v2700_v28, %v3838_v35  ;;  %v1714_v4 = vmul.f32 %v2700_v28, %v3842_v57  ;;  %v1715_v11 = vmul.f32 %v2700_v28, %v3848_v15  ;;  %1736 = vst [vmem:[#allocation2] sm:$0xff] %v1704_v48 }
 0x262   : > { %1737 = vst [vmem:[#allocation2 + $0x8] sm:$0xff] %v1705_v40  ;;  %1738 = vst [vmem:[#allocation2 + $0x10] sm:$0xff] %v1706_v63  ;;  %v1716_v33 = vmul.f32 %v2700_v28, %v3852_v43  ;;  %v1717_v8 = vmul.f32 %v2700_v28, %v3859_v6  ;;  %v1718_v55 = vmul.f32 %v2700_v28, %v3867_v52 }
 0x263   : > { %1739 = vst [vmem:[#allocation2 + $0x18] sm:$0xff] %v1707_v58  ;;  %v1719_v44 = vmul.f32 %v2700_v28, %v3871_v24  ;;  %1740 = vst [vmem:[#allocation2 + $0x20] sm:$0xff] %v1708_v29  ;;  %v1684_v14 = vadd.f32 %v1683_v12, %v3942_v51  ;;  %v1649_v36 = vmul.f32 %v2702_v7, %v3776_v0 }
 0x264   : > { %1741 = vst [vmem:[#allocation2 + $0x28] sm:$0xff] %v1709_v3  ;;  %1742 = vst [vmem:[#allocation2 + $0x30] sm:$0xff] %v1710_v50 }
 0x265   : > { %1743 = vst [vmem:[#allocation2 + $0x38] sm:$0xff] %v1711_v46  ;;  %1744 = vst [vmem:[#allocation2 + $0x40] sm:$0xff] %v1712_v21  ;;  %v1685_v10 = vadd.f32 %v1684_v14, %v1649_v36 }
 0x266   : > { %1745 = vst [vmem:[#allocation2 + $0x48] sm:$0xff] %v1713_v47  ;;  %1746 = vst [vmem:[#allocation2 + $0x50] sm:$0xff] %v1714_v4 }
 0x267   : > { %1747 = vst [vmem:[#allocation2 + $0x58] sm:$0xff] %v1715_v11  ;;  %1748 = vst [vmem:[#allocation2 + $0x60] sm:$0xff] %v1716_v33  ;;  %v1686_v35 = vrot.slane %v1685_v10, 4 }
 0x268   : > { %1749 = vst [vmem:[#allocation2 + $0x68] sm:$0xff] %v1717_v8  ;;  %1750 = vst [vmem:[#allocation2 + $0x70] sm:$0xff] %v1718_v55 }
 0x269   : > { %1751 = vst [vmem:[#allocation2 + $0x78] sm:$0xff] %v1719_v44  ;;  %v1687_v57 = vadd.f32 %v1686_v35, %v1685_v10 }
 0x26b   : > { %v1688_v15 = vrot.slane %v1687_v57, 2 }
 0x26d   : > { %v1689_v43 = vadd.f32 %v1688_v15, %v1687_v57 }
 0x26f   : > { %v1690_v6 = vrot.slane %v1689_v43, 1 }
 0x271   : > { %v1691_v52 = vadd.f32 %v1690_v6, %v1689_v43 }
 0x273   : > { %v1693_v24 = vadd.f32 1e-06, %v1691_v52 }
 0x275   : > { %2703 = vlog2.f32 %v1693_v24 }
 0x27f   : > { %v2704_v42 = vpop.eup %2703 }
 0x280   : > { %v1697_v39 = vmul.f32 0.6931472, %v2704_v42 }
 0x282   : > { %v1699_v32 = vsub.f32 -4.852029, %v1697_v39 }
 0x284   : > { %v1702_v25 = vmul.f32 1.442695, %v1699_v32 }
 0x286   : > { %2705 = vpow2.f32 %v1702_v25 }
 0x290   : > { %v2706_v30 = vpop.eup %2705 }
 0x291   : > { %v1720_v0 = vmul.f32 %v2706_v30, %v3876_v49  ;;  %v1721_v23 = vmul.f32 %v2706_v30, %v3880_v1  ;;  %v1722_v26 = vmul.f32 %v2706_v30, %v3885_v37  ;;  %v1723_v19 = vmul.f32 %v2706_v30, %v3888_v13 }
 0x292   : > { %v1724_v62 = vmul.f32 %v2706_v30, %v3892_v59  ;;  %v1725_v41 = vmul.f32 %v2706_v30, %v3897_v2  ;;  %v1726_v20 = vmul.f32 %v2706_v30, %v3903_v18  ;;  %v1727_v5 = vmul.f32 %v2706_v30, %v3908_v17 }
 0x293   : > { %v1728_v53 = vmul.f32 %v2706_v30, %v3913_v45  ;;  %v1729_v56 = vmul.f32 %v2706_v30, %v3917_v22  ;;  %v1730_v49 = vmul.f32 %v2706_v30, %v3923_v61  ;;  %v1731_v1 = vmul.f32 %v2706_v30, %v3930_v31  ;;  %1752 = vst [vmem:[#allocation2 + $0x80] sm:$0xff] %v1720_v0 }
 0x294   : > { %1753 = vst [vmem:[#allocation2 + $0x88] sm:$0xff] %v1721_v23  ;;  %1754 = vst [vmem:[#allocation2 + $0x90] sm:$0xff] %v1722_v26  ;;  %v1732_v37 = vmul.f32 %v2706_v30, %v3934_v60  ;;  %v1733_v13 = vmul.f32 %v2706_v30, %v3938_v9  ;;  %v1734_v59 = vmul.f32 %v2706_v30, %v3942_v51 }
 0x295   : > { %1755 = vst [vmem:[#allocation2 + $0x98] sm:$0xff] %v1723_v19  ;;  %v1735_v2 = vmul.f32 %v2706_v30, %v1649_v36  ;;  %1756 = vst [vmem:[#allocation2 + $0xa0] sm:$0xff] %v1724_v62 }
 0x296   : > { %1757 = vst [vmem:[#allocation2 + $0xa8] sm:$0xff] %v1725_v41  ;;  %1758 = vst [vmem:[#allocation2 + $0xb0] sm:$0xff] %v1726_v20 }
 0x297   : > { %1759 = vst [vmem:[#allocation2 + $0xb8] sm:$0xff] %v1727_v5  ;;  %1760 = vst [vmem:[#allocation2 + $0xc0] sm:$0xff] %v1728_v53 }
 0x298   : > { %1761 = vst [vmem:[#allocation2 + $0xc8] sm:$0xff] %v1729_v56  ;;  %1762 = vst [vmem:[#allocation2 + $0xd0] sm:$0xff] %v1730_v49 }
 0x299   : > { %1763 = vst [vmem:[#allocation2 + $0xd8] sm:$0xff] %v1731_v1  ;;  %1764 = vst [vmem:[#allocation2 + $0xe0] sm:$0xff] %v1732_v37 }
 0x29a   : > { %1765 = vst [vmem:[#allocation2 + $0xe8] sm:$0xff] %v1733_v13  ;;  %1766 = vst [vmem:[#allocation2 + $0xf0] sm:$0xff] %v1734_v59 }
 0x29b   : > { %1767 = vst [vmem:[#allocation2 + $0xf8] sm:$0xff] %v1735_v2 }
 0x2e4   : > { %v1865_v18 = vpop.xlane.xlu0 %1864 }
 0x2e5   : > { %v1866_v17 = vrot.slane %v1865_v18, 4 }
 0x2e7   : > { %v1867_v45 = vadd.f32 %v1866_v17, %v1865_v18 }
 0x2e9   : > { %v1868_v22 = vrot.slane %v1867_v45, 2 }
 0x2eb   : > { %v1869_v61 = vadd.f32 %v1868_v22, %v1867_v45 }
 0x2ed   : > { %v1870_v31 = vrot.slane %v1869_v61, 1 }
 0x2ef   : > { %v1871_v34 = vadd.f32 %v1870_v31, %v1869_v61 }
 0x2f1   : > { %2492 = vpush %v1871_v34 }
 0x322   : > { %s2493_s13 = spop %2492 }
 0x323   : > { %s1873_s14 = smul.f32 0.5, %s2493_s13 }
 0x325   : > { %p1874_p1 = scmp.lt.f32.partialorder %s1873_s14, 0.1 }
 0x327   : > { %s1875_s15 = scalar_select %p1874_p1, 1, 0 }
 0x329   : > { %1876 = sst [smem:[#allocation3]] %s1875_s15 }
 0x32a PF: > { %s1324_s11 = sadd.s32 1, %s2761_s11  }
 0x32b   : > { %p1321_p2 = scmp.ge.s32.totalorder %s1324_s11, 50  }
 0x32c   :  { %v1893_v54 = vld [vmem:[#allocation2 + $0x80] sm:$0xff] (%p1321_p2)  ;;  %v1894_v27 = vld [vmem:[#allocation2 + $0x88] sm:$0xff] (%p1321_p2)  ;;  %v1895_v40 = vld [vmem:[#allocation2 + $0x90] sm:$0xff] (%p1321_p2)  ;;  %s2764_s16 = smov (%p1321_p2), [#allocation4]   ;;  %s2765_s18 = smov (%p1321_p2), [#allocation6]  }
 0x32d   :  { %1323 = sbr.rel (!%p1321_p2) target bundleno = 338 (0x152), region = 56  ;;  %v1925_v60 = vld [vmem:[#allocation6 + $0x80] sm:$0xff] (%p1321_p2)  ;;  %1957 = vst [vmem:[#allocation4 + $0x80] sm:$0xff] (%p1321_p2), %v1893_v54  ;;  %v1926_v28 = vld [vmem:[#allocation6 + $0x88] sm:$0xff] (%p1321_p2)  ;;  %1958 = vst [vmem:[#allocation4 + $0x88] sm:$0xff] (%p1321_p2), %v1894_v27  ;;  %s2121_s17 = sshll.u32 (%p1321_p2), %s2764_s16, 4  ;;  %s2122_s17 = int_to_ptr.vmem [resolvable:$true] %s2121_s17 }
 0x32e   :  { %v1877_v16 = vld [vmem:[#allocation2] sm:$0xff] (%p1321_p2)  ;;  %v1989_v38 = vmul.f32 (%p1321_p2), %v1925_v60, %v1893_v54  ;;  %v1878_v51 = vld [vmem:[#allocation2 + $0x8] sm:$0xff] (%p1321_p2)  ;;  %v1990_v63 = vmul.f32 (%p1321_p2), %v1926_v28, %v1894_v27  ;;  %1959 = vst [vmem:[#allocation4 + $0x90] sm:$0xff] (%p1321_p2), %v1895_v40  ;;  %v1879_v58 = vld [vmem:[#allocation2 + $0x10] sm:$0xff] (%p1321_p2)  ;;  %s2133_s19 = sshll.u32 (%p1321_p2), %s2765_s18, 4  ;;  %s2707_s20 = scalar_lea.vmem (%p1321_p2), %s2122_s17, 4096  ;;  %s3992_s19 = int_to_ptr.vmem [resolvable:$true] %s2133_s19 }
 0x32f   :  { %v1909_v9 = vld [vmem:[#allocation6] sm:$0xff] (%p1321_p2)  ;;  %1941 = vst [vmem:[#allocation4] sm:$0xff] (%p1321_p2), %v1877_v16  ;;  %v1910_v48 = vld [vmem:[#allocation6 + $0x8] sm:$0xff] (%p1321_p2)  ;;  %1942 = vst [vmem:[#allocation4 + $0x8] sm:$0xff] (%p1321_p2), %v1878_v51  ;;  %p2708_p3 = scmp.ne.s32.totalorder (%p1321_p2), %s2122_s17, %s2707_s20  ;;  %p2712_p4 = scmp.lt.s32.totalorder (%p1321_p2), %s2122_s17, %s2122_s17 }
 0x330   :  { %v1973_v12 = vmul.f32 (%p1321_p2), %v1909_v9, %v1877_v16  ;;  %2037 = vadd.xlane.f32.xlu1 (%p1321_p2), %v1989_v38  ;;  %v1974_v7 = vmul.f32 (%p1321_p2), %v1910_v48, %v1878_v51  ;;  %v1927_v29 = vld [vmem:[#allocation6 + $0x90] sm:$0xff] (%p1321_p2)  ;;  %1943 = vst [vmem:[#allocation4 + $0x10] sm:$0xff] (%p1321_p2), %v1879_v58  ;;  %v1896_v3 = vld [vmem:[#allocation2 + $0x98] sm:$0xff] (%p1321_p2)  ;;  %v1897_v21 = vld [vmem:[#allocation2 + $0xa0] sm:$0xff] (%p1321_p2)  ;;  %p2713_p5 = scmp.lt.s32.totalorder (%p1321_p2), %s2707_s20, %s2707_s20 }
 0x331   :  { %v1880_v50 = vld [vmem:[#allocation2 + $0x18] sm:$0xff] (%p1321_p2)  ;;  %v1911_v46 = vld [vmem:[#allocation6 + $0x10] sm:$0xff] (%p1321_p2)  ;;  %1960 = vst [vmem:[#allocation4 + $0x98] sm:$0xff] (%p1321_p2), %v1896_v3  ;;  %1961 = vst [vmem:[#allocation4 + $0xa0] sm:$0xff] (%p1321_p2), %v1897_v21  ;;  %v1991_v11 = vmul.f32 (%p1321_p2), %v1927_v29, %v1895_v40 }
 0x332   :  { %2005 = vadd.xlane.f32.xlu0 (%p1321_p2), %v1973_v12  ;;  %1944 = vst [vmem:[#allocation4 + $0x18] sm:$0xff] (%p1321_p2), %v1880_v50  ;;  %v1881_v47 = vld [vmem:[#allocation2 + $0x20] sm:$0xff] (%p1321_p2)  ;;  %v1898_v4 = vld [vmem:[#allocation2 + $0xa8] sm:$0xff] (%p1321_p2)  ;;  %v1975_v8 = vmul.f32 (%p1321_p2), %v1911_v46, %v1879_v58  ;;  %v1928_v55 = vld [vmem:[#allocation6 + $0x98] sm:$0xff] (%p1321_p2)  ;;  %p2714_p6 = por (%p1321_p2), %p2713_p5, %p2712_p4 }
 0x333   :  { %1945 = vst [vmem:[#allocation4 + $0x20] sm:$0xff] (%p1321_p2), %v1881_v47  ;;  %1962 = vst [vmem:[#allocation4 + $0xa8] sm:$0xff] (%p1321_p2), %v1898_v4  ;;  %v1882_v33 = vld [vmem:[#allocation2 + $0x28] sm:$0xff] (%p1321_p2)  ;;  %v1899_v44 = vld [vmem:[#allocation2 + $0xb0] sm:$0xff] (%p1321_p2)  ;;  %v1992_v15 = vmul.f32 (%p1321_p2), %v1928_v55, %v1896_v3 }
 0x334   :  { %2039 = vadd.xlane.f32.xlu1 %v1990_v63  ;;  %1946 = vst [vmem:[#allocation4 + $0x28] sm:$0xff] %v1882_v33  ;;  %v1883_v14 = vld [vmem:[#allocation2 + $0x30] sm:$0xff]  ;;  %v1912_v36 = vld [vmem:[#allocation6 + $0x18] sm:$0xff]  ;;  %1963 = vst [vmem:[#allocation4 + $0xb0] sm:$0xff] %v1899_v44  ;;  %p2715_p7 = pnand %p2714_p6, %p2708_p3 }
 0x335   :  { %1947 = vst [vmem:[#allocation4 + $0x30] sm:$0xff] %v1883_v14  ;;  %v1900_v10 = vld [vmem:[#allocation2 + $0xb8] sm:$0xff]  ;;  %v3980_v57 = vld [vmem:[#allocation2 + $0xc0] sm:$0xff]  ;;  %v1976_v6 = vmul.f32 %v1912_v36, %v1880_v50  ;;  %v1902_v24 = vld [vmem:[#allocation2 + $0xc8] sm:$0xff] }
 0x336   :  { %2007 = vadd.xlane.f32.xlu0 %v1974_v7  ;;  %1964 = vst [vmem:[#allocation4 + $0xb8] sm:$0xff] %v1900_v10  ;;  %v1884_v35 = vld [vmem:[#allocation2 + $0x38] sm:$0xff]  ;;  %1965 = vst [vmem:[#allocation4 + $0xc0] sm:$0xff] %v3980_v57  ;;  %v1885_v43 = vld [vmem:[#allocation2 + $0x40] sm:$0xff] }
 0x337   :  { %1948 = vst [vmem:[#allocation4 + $0x38] sm:$0xff] %v1884_v35  ;;  %v1929_v52 = vld [vmem:[#allocation6 + $0xa0] sm:$0xff]  ;;  %1949 = vst [vmem:[#allocation4 + $0x40] sm:$0xff] %v1885_v43  ;;  %v1886_v42 = vld [vmem:[#allocation2 + $0x48] sm:$0xff] }
 0x338   :  { %2041 = vadd.xlane.f32.xlu1 %v1991_v11  ;;  %v1913_v39 = vld [vmem:[#allocation6 + $0x20] sm:$0xff]  ;;  %1966 = vst [vmem:[#allocation4 + $0xc8] sm:$0xff] %v1902_v24  ;;  %1950 = vst [vmem:[#allocation4 + $0x48] sm:$0xff] %v1886_v42  ;;  %v1903_v32 = vld [vmem:[#allocation2 + $0xd0] sm:$0xff]  ;;  %v1993_v0 = vmul.f32 %v1929_v52, %v1897_v21 }
 0x339   :  { %1967 = vst [vmem:[#allocation4 + $0xd0] sm:$0xff] %v1903_v32  ;;  %v1887_v25 = vld [vmem:[#allocation2 + $0x50] sm:$0xff]  ;;  %v3983_v30 = vld [vmem:[#allocation2 + $0xd8] sm:$0xff]  ;;  %v1977_v26 = vmul.f32 %v1913_v39, %v1881_v47  ;;  %v1930_v19 = vld [vmem:[#allocation6 + $0xa8] sm:$0xff] }
 0x33a   :  { %2009 = vadd.xlane.f32.xlu0 %v1975_v8  ;;  %1951 = vst [vmem:[#allocation4 + $0x50] sm:$0xff] %v1887_v25  ;;  %1968 = vst [vmem:[#allocation4 + $0xd8] sm:$0xff] %v3983_v30  ;;  %v1888_v23 = vld [vmem:[#allocation2 + $0x58] sm:$0xff]  ;;  %v1905_v62 = vld [vmem:[#allocation2 + $0xe0] sm:$0xff]  ;;  %v1994_v49 = vmul.f32 %v1930_v19, %v1898_v4 }
 0x33b   :  { %1952 = vst [vmem:[#allocation4 + $0x58] sm:$0xff] %v1888_v23  ;;  %v1889_v41 = vld [vmem:[#allocation2 + $0x60] sm:$0xff]  ;;  %v1914_v20 = vld [vmem:[#allocation6 + $0x28] sm:$0xff]  ;;  %1969 = vst [vmem:[#allocation4 + $0xe0] sm:$0xff] %v1905_v62 }
 0x33c   :  { %2043 = vadd.xlane.f32.xlu1 %v1992_v15  ;;  %1953 = vst [vmem:[#allocation4 + $0x60] sm:$0xff] %v1889_v41  ;;  %v1906_v5 = vld [vmem:[#allocation2 + $0xe8] sm:$0xff]  ;;  %v3986_v56 = vld [vmem:[#allocation2 + $0xf0] sm:$0xff]  ;;  %v1978_v37 = vmul.f32 %v1914_v20, %v1882_v33  ;;  %v1908_v59 = vld [vmem:[#allocation2 + $0xf8] sm:$0xff] }
 0x33d   :  { %1970 = vst [vmem:[#allocation4 + $0xe8] sm:$0xff] %v1906_v5  ;;  %v1890_v53 = vld [vmem:[#allocation2 + $0x68] sm:$0xff]  ;;  %1971 = vst [vmem:[#allocation4 + $0xf0] sm:$0xff] %v3986_v56  ;;  %v1891_v1 = vld [vmem:[#allocation2 + $0x70] sm:$0xff] }
 0x33e   :  { %2011 = vadd.xlane.f32.xlu0 %v1976_v6  ;;  %1954 = vst [vmem:[#allocation4 + $0x68] sm:$0xff] %v1890_v53  ;;  %v1931_v13 = vld [vmem:[#allocation6 + $0xb0] sm:$0xff]  ;;  %1955 = vst [vmem:[#allocation4 + $0x70] sm:$0xff] %v1891_v1  ;;  %v1892_v2 = vld [vmem:[#allocation2 + $0x78] sm:$0xff] }
 0x33f   :  { %v1915_v18 = vld [vmem:[#allocation6 + $0x30] sm:$0xff]  ;;  %1972 = vst [vmem:[#allocation4 + $0xf8] sm:$0xff] %v1908_v59  ;;  %1956 = vst [vmem:[#allocation4 + $0x78] sm:$0xff] %v1892_v2  ;;  %v1995_v17 = vmul.f32 %v1931_v13, %v1899_v44  ;;  %v1932_v22 = vld [vmem:[#allocation6 + $0xb8] sm:$0xff] }
 0x340   :  { %2045 = vadd.xlane.f32.xlu1 %v1993_v0  ;;  %v1979_v45 = vmul.f32 %v1915_v18, %v1883_v14  ;;  %v1916_v61 = vld [vmem:[#allocation6 + $0x38] sm:$0xff]  ;;  %v1996_v31 = vmul.f32 %v1932_v22, %v1900_v10  ;;  %v1933_v54 = vld [vmem:[#allocation6 + $0xc0] sm:$0xff]  ;;  %v1934_v9 = vld [vmem:[#allocation6 + $0xc8] sm:$0xff] }
 0x341   :  { %v1980_v34 = vmul.f32 %v1916_v61, %v1884_v35  ;;  %v1917_v60 = vld [vmem:[#allocation6 + $0x40] sm:$0xff]  ;;  %v1997_v16 = vmul.f32 %v1933_v54, %v3980_v57  ;;  %v1918_v27 = vld [vmem:[#allocation6 + $0x48] sm:$0xff]  ;;  %v1998_v28 = vmul.f32 %v1934_v9, %v1902_v24  ;;  %v1935_v51 = vld [vmem:[#allocation6 + $0xd0] sm:$0xff] }
 0x342   :  { %2013 = vadd.xlane.f32.xlu0 %v1977_v26  ;;  %v1981_v38 = vmul.f32 %v1917_v60, %v1885_v43  ;;  %v1982_v12 = vmul.f32 %v1918_v27, %v1886_v42  ;;  %v1919_v48 = vld [vmem:[#allocation6 + $0x50] sm:$0xff]  ;;  %v1999_v40 = vmul.f32 %v1935_v51, %v1903_v32  ;;  %v1936_v58 = vld [vmem:[#allocation6 + $0xd8] sm:$0xff]  ;;  %v1937_v50 = vld [vmem:[#allocation6 + $0xe0] sm:$0xff] }
 0x343   :  { %v1983_v63 = vmul.f32 %v1919_v48, %v1887_v25  ;;  %v1920_v7 = vld [vmem:[#allocation6 + $0x58] sm:$0xff]  ;;  %v2000_v29 = vmul.f32 %v1936_v58, %v3983_v30  ;;  %v1921_v46 = vld [vmem:[#allocation6 + $0x60] sm:$0xff]  ;;  %v2001_v21 = vmul.f32 %v1937_v50, %v1905_v62  ;;  %v1938_v4 = vld [vmem:[#allocation6 + $0xe8] sm:$0xff] }
 0x344   :  { %2047 = vadd.xlane.f32.xlu1 %v1994_v49  ;;  %v1984_v3 = vmul.f32 %v1920_v7, %v1888_v23  ;;  %v1985_v47 = vmul.f32 %v1921_v46, %v1889_v41  ;;  %v1922_v11 = vld [vmem:[#allocation6 + $0x68] sm:$0xff]  ;;  %v2002_v33 = vmul.f32 %v1938_v4, %v1906_v5  ;;  %v1939_v55 = vld [vmem:[#allocation6 + $0xf0] sm:$0xff]  ;;  %v1940_v10 = vld [vmem:[#allocation6 + $0xf8] sm:$0xff] }
 0x345   :  { %v1986_v8 = vmul.f32 %v1922_v11, %v1890_v53  ;;  %v1923_v44 = vld [vmem:[#allocation6 + $0x70] sm:$0xff]  ;;  %v2003_v14 = vmul.f32 %v1939_v55, %v3986_v56  ;;  %v1924_v35 = vld [vmem:[#allocation6 + $0x78] sm:$0xff]  ;;  %v2004_v57 = vmul.f32 %v1940_v10, %v1908_v59 }
 0x346   :  { %2015 = vadd.xlane.f32.xlu0 %v1978_v37  ;;  %v1987_v36 = vmul.f32 %v1923_v44, %v1891_v1  ;;  %v1988_v15 = vmul.f32 %v1924_v35, %v1892_v2 }
 0x348   :  { %2049 = vadd.xlane.f32.xlu1 %v1995_v17 }
 0x34a   :  { %2017 = vadd.xlane.f32.xlu0 %v1979_v45 }
 0x34c   :  { %2051 = vadd.xlane.f32.xlu1 %v1996_v31 }
 0x34e   :  { %2019 = vadd.xlane.f32.xlu0 %v1980_v34 }
 0x350   :  { %2053 = vadd.xlane.f32.xlu1 %v1997_v16 }
 0x352   :  { %2021 = vadd.xlane.f32.xlu0 %v1981_v38 }
 0x354   :  { %2055 = vadd.xlane.f32.xlu1 %v1998_v28 }
 0x356   :  { %2023 = vadd.xlane.f32.xlu0 %v1982_v12 }
 0x358   :  { %2057 = vadd.xlane.f32.xlu1 %v1999_v40 }
 0x35a   :  { %2025 = vadd.xlane.f32.xlu0 %v1983_v63 }
 0x35c   :  { %2059 = vadd.xlane.f32.xlu1 %v2000_v29 }
 0x35e   :  { %2027 = vadd.xlane.f32.xlu0 %v1984_v3 }
 0x360   :  { %2061 = vadd.xlane.f32.xlu1 %v2001_v21 }
 0x362   :  { %2029 = vadd.xlane.f32.xlu0 %v1985_v47 }
 0x364   :  { %2063 = vadd.xlane.f32.xlu1 %v2002_v33 }
 0x366   :  { %2031 = vadd.xlane.f32.xlu0 %v1986_v8 }
 0x368   :  { %2065 = vadd.xlane.f32.xlu1 %v2003_v14 }
 0x36a   :  { %2033 = vadd.xlane.f32.xlu0 %v1987_v36 }
 0x36c   :  { %2067 = vadd.xlane.f32.xlu1 %v2004_v57 }
 0x36e   :  { %2035 = vadd.xlane.f32.xlu0 %v1988_v15 }
 0x36f   :  { %2718 = shalt.err (!%p2715_p7)
}
 0x370   :  { %s2719_s1 = scalar_lea.hbm %s4032_s3, 4096 }
 0x371   :  { %p2720_p8 = scmp.ne.s32.totalorder %s4032_s3, %s2719_s1  ;;  %p2723_p9 = scmp.lt.u32.totalorder %s2719_s1, %s4032_s3 }
 0x373   :  { %p2725_p10 = pnand %p2723_p9, %p2720_p8 }
 0x375   :  { %2728 = shalt.err (!%p2725_p10)
}
 0x376   :  { %s2766_s27 = smov 128   ;;  %s2767_s28 = smov 8  }
 0x377   :  { %2127 = dma.vmem_to_hbm [thread:$0]  %s2122_s17, 4096, %s4032_s3, [#allocation5], %s2766_s27, %s2766_s27, %s2767_s28  }
 0x378   :  { %s2729_s5 = scalar_lea.vmem %s3992_s19, 4096  ;;  %p2734_p12 = scmp.lt.s32.totalorder %s3992_s19, %s3992_s19 }
 0x379   :  { %p2730_p11 = scmp.ne.s32.totalorder %s3992_s19, %s2729_s5  ;;  %p2735_p13 = scmp.lt.s32.totalorder %s2729_s5, %s2729_s5 }
 0x37b   :  { %p2736_p0 = por %p2735_p13, %p2734_p12 }
 0x37d   :  { %p2737_p1 = pnand %p2736_p0, %p2730_p11 }
 0x37f   :  { %2740 = shalt.err (!%p2737_p1)
}
 0x380   :  { %s2741_s8 = scalar_lea.hbm %s4033_s4, 4096 }
 0x381   :  { %p2742_p2 = scmp.ne.s32.totalorder %s4033_s4, %s2741_s8  ;;  %p2745_p3 = scmp.lt.u32.totalorder %s2741_s8, %s4033_s4 }
 0x383   :  { %p2747_p4 = pnand %p2745_p3, %p2742_p2 }
 0x385   :  { %2750 = shalt.err (!%p2747_p4)
}
 0x386   :  { %2139 = dma.vmem_to_hbm [thread:$0]  %s3992_s19, 4096, %s4033_s4, [#allocation7], %s2766_s27, %s2766_s27, %s2767_s28   ;;  %vm2111_vm2 = vcmask 0  }
 0x3bd   :  { %v2038_v43 = vpop.xlane.xlu1 %2037 }
 0x3bf   :  { %v2006_v6 = vpop.xlane.xlu0 %2005 }
 0x3c1   :  { %v2040_v52 = vpop.xlane.xlu1 %2039 }
 0x3c2   :  { %v2090_v53 = vadd.f32 %v2040_v52, %v2038_v43 }
 0x3c3   :  { %v2008_v24 = vpop.xlane.xlu0 %2007 }
 0x3c4   :  { %v2069_v49 = vadd.f32 %v2008_v24, %v2006_v6 }
 0x3c5   :  { %v2042_v42 = vpop.xlane.xlu1 %2041 }
 0x3c6   :  { %v2091_v1 = vadd.f32 %v2090_v53, %v2042_v42 }
 0x3c7   :  { %v2010_v39 = vpop.xlane.xlu0 %2009 }
 0x3c8   :  { %v2070_v37 = vadd.f32 %v2069_v49, %v2010_v39 }
 0x3c9   :  { %v2044_v32 = vpop.xlane.xlu1 %2043 }
 0x3ca   :  { %v2092_v59 = vadd.f32 %v2091_v1, %v2044_v32 }
 0x3cb   :  { %v2012_v25 = vpop.xlane.xlu0 %2011 }
 0x3cc   :  { %v2071_v18 = vadd.f32 %v2070_v37, %v2012_v25 }
 0x3cd   :  { %v2046_v30 = vpop.xlane.xlu1 %2045 }
 0x3ce   :  { %v2093_v17 = vadd.f32 %v2092_v59, %v2046_v30 }
 0x3cf   :  { %v2014_v0 = vpop.xlane.xlu0 %2013 }
 0x3d0   :  { %v2072_v45 = vadd.f32 %v2071_v18, %v2014_v0 }
 0x3d1   :  { %v2048_v23 = vpop.xlane.xlu1 %2047 }
 0x3d2   :  { %v2094_v61 = vadd.f32 %v2093_v17, %v2048_v23 }
 0x3d3   :  { %v2016_v26 = vpop.xlane.xlu0 %2015 }
 0x3d4   :  { %v2073_v34 = vadd.f32 %v2072_v45, %v2016_v26 }
 0x3d5   :  { %v2050_v19 = vpop.xlane.xlu1 %2049 }
 0x3d6   :  { %v2095_v54 = vadd.f32 %v2094_v61, %v2050_v19 }
 0x3d7   :  { %v2018_v62 = vpop.xlane.xlu0 %2017 }
 0x3d8   :  { %v2074_v60 = vadd.f32 %v2073_v34, %v2018_v62 }
 0x3d9   :  { %v2052_v41 = vpop.xlane.xlu1 %2051 }
 0x3da   :  { %v2096_v38 = vadd.f32 %v2095_v54, %v2052_v41 }
 0x3db   :  { %v2020_v20 = vpop.xlane.xlu0 %2019 }
 0x3dc   :  { %v2075_v27 = vadd.f32 %v2074_v60, %v2020_v20 }
 0x3dd   :  { %v2054_v5 = vpop.xlane.xlu1 %2053 }
 0x3de   :  { %v2097_v28 = vadd.f32 %v2096_v38, %v2054_v5 }
 0x3df   :  { %v2022_v56 = vpop.xlane.xlu0 %2021 }
 0x3e0   :  { %v2076_v12 = vadd.f32 %v2075_v27, %v2022_v56 }
 0x3e1   :  { %v2056_v13 = vpop.xlane.xlu1 %2055 }
 0x3e2   :  { %v2098_v48 = vadd.f32 %v2097_v28, %v2056_v13 }
 0x3e3   :  { %v2024_v2 = vpop.xlane.xlu0 %2023 }
 0x3e4   :  { %v2077_v63 = vadd.f32 %v2076_v12, %v2024_v2 }
 0x3e5   :  { %v2058_v22 = vpop.xlane.xlu1 %2057 }
 0x3e6   :  { %v2099_v58 = vadd.f32 %v2098_v48, %v2058_v22 }
 0x3e7   :  { %v2026_v31 = vpop.xlane.xlu0 %2025 }
 0x3e8   :  { %v2078_v7 = vadd.f32 %v2077_v63, %v2026_v31 }
 0x3e9   :  { %v2060_v16 = vpop.xlane.xlu1 %2059 }
 0x3ea   :  { %v2100_v3 = vadd.f32 %v2099_v58, %v2060_v16 }
 0x3eb   :  { %v2028_v9 = vpop.xlane.xlu0 %2027 }
 0x3ec   :  { %v2079_v46 = vadd.f32 %v2078_v7, %v2028_v9 }
 0x3ed   :  { %v2062_v51 = vpop.xlane.xlu1 %2061 }
 0x3ee   :  { %v2101_v21 = vadd.f32 %v2100_v3, %v2062_v51 }
 0x3ef   :  { %v2030_v40 = vpop.xlane.xlu0 %2029 }
 0x3f0   :  { %v2080_v47 = vadd.f32 %v2079_v46, %v2030_v40 }
 0x3f1   :  { %v2064_v29 = vpop.xlane.xlu1 %2063 }
 0x3f2   :  { %v2102_v11 = vadd.f32 %v2101_v21, %v2064_v29 }
 0x3f3   :  { %v2032_v50 = vpop.xlane.xlu0 %2031 }
 0x3f4   :  { %v2081_v8 = vadd.f32 %v2080_v47, %v2032_v50 }
 0x3f5   :  { %v2066_v4 = vpop.xlane.xlu1 %2065 }
 0x3f6   :  { %v2103_v55 = vadd.f32 %v2102_v11, %v2066_v4 }
 0x3f7   :  { %v2034_v33 = vpop.xlane.xlu0 %2033 }
 0x3f8   :  { %v2082_v44 = vadd.f32 %v2081_v8, %v2034_v33 }
 0x3f9   :  { %v2068_v14 = vpop.xlane.xlu1 %2067 }
 0x3fa   :  { %v2104_v36 = vadd.f32 %v2103_v55, %v2068_v14 }
 0x3fb   :  { %v2036_v10 = vpop.xlane.xlu0 %2035 }
 0x3fc   :  { %v2083_v35 = vadd.f32 %v2082_v44, %v2036_v10  ;;  %v2105_v57 = vrot.slane %v2104_v36, 4 }
 0x3fe   :  { %v2084_v15 = vrot.slane %v2083_v35, 4  ;;  %v2106_v43 = vadd.f32 %v2105_v57, %v2104_v36 }
 0x400   :  { %v2085_v6 = vadd.f32 %v2084_v15, %v2083_v35  ;;  %v2107_v52 = vrot.slane %v2106_v43, 2 }
 0x402   :  { %v2086_v24 = vrot.slane %v2085_v6, 2  ;;  %v2108_v42 = vadd.f32 %v2107_v52, %v2106_v43 }
 0x404   :  { %v2087_v39 = vadd.f32 %v2086_v24, %v2085_v6  ;;  %v2109_v32 = vrot.slane %v2108_v42, 1 }
 0x406   :  { %v2088_v25 = vrot.slane %v2087_v39, 1  ;;  %v2110_v30 = vadd.f32 %v2109_v32, %v2108_v42 }
 0x408   :  { %v2089_v0 = vadd.f32 %v2088_v25, %v2087_v39  ;;  %2113 = vst.msk [vmem:[%s4031_s2 + $0x1] sm:$0x1] %vm2111_vm2, %v2110_v30 }
 0x40a   :  { %2112 = vst.msk [vmem:[%s4031_s2] sm:$0x1] %vm2111_vm2, %v2089_v0 }
 0x40b   :  { %2755 = dma.done.wait [#allocation5], 4096  }
 0x40c   :  { %2756 = vsyncadd [#allocation5], 4294963200 }
 0x40d   :  { %2757 = dma.done.wait [#allocation7], 4096  }
 0x40e   :  { %2758 = vsyncadd [#allocation7], 4294963200 }
 0x40f   :  { %2148 = vsyncpa [#allocation5], 1 }
 0x410   :  { %2149 = vsyncpa [#allocation7], 1 }

</bundles_post_ra>
